<compile_context>
chip_gen: v7x
topology: tpu7x:2x2x1
jax: 0.10.0
libtpu: 0.0.40
codegen_flags: <defaults>
</compile_context>

<pallas_src>
import functools
import math

import jax
import jax.numpy as jnp
from jax.experimental import pallas as pl
from jax.experimental.pallas import tpu as pltpu

BN_EPS = 1e-5
NORM_EPS = 1e-12


def _round_up(x, m):
    return ((x + m - 1) // m) * m


def _sq_spec(*dims):
    """Full-extent BlockSpec for one view; leading view dim squeezed away."""
    n = len(dims)
    return pl.BlockSpec((pl.Squeezed(),) + tuple(dims),
                        lambda v, _n=n: (v,) + (0,) * _n)


# ----------------------------------------------------------------------------
# Shared per-view math: conv-GAP matmul -> trunk matmul -> projector
#   (Linear -> BatchNorm1d -> ReLU -> Linear -> BatchNorm1d) -> L2 norm / sqrt(tau)
# BatchNorm in training mode (biased batch statistics, eps=1e-5).
# Pre-BN Linear biases are omitted: BN subtracts the batch mean so they cancel.
# ----------------------------------------------------------------------------
def _view_core(xbar, cw, tw, w1, bn1, w2, bn2, inv_sqrt_tau):
    # conv1 + global-average-pool, commuted: GAP(conv(x)) == mean(patches) @ W
    gap = jnp.dot(xbar.astype(jnp.bfloat16), cw,
                  preferred_element_type=jnp.float32)            # [B, 128]
    feat = jnp.dot(gap.astype(jnp.bfloat16), tw,
                   preferred_element_type=jnp.float32)           # [B, 512]

    h = jnp.dot(feat.astype(jnp.bfloat16), w1,
                preferred_element_type=jnp.float32)              # [B, 512]
    mu = jnp.mean(h, axis=0, keepdims=True)
    var = jnp.mean((h - mu) * (h - mu), axis=0, keepdims=True)
    h = (h - mu) * jax.lax.rsqrt(var + BN_EPS) * bn1[0:1] + bn1[1:2]
    h = jnp.maximum(h, 0.0)

    y = jnp.dot(h.astype(jnp.bfloat16), w2,
                preferred_element_type=jnp.float32)              # [B, 128]
    mu2 = jnp.mean(y, axis=0, keepdims=True)
    var2 = jnp.mean((y - mu2) * (y - mu2), axis=0, keepdims=True)
    y = (y - mu2) * jax.lax.rsqrt(var2 + BN_EPS) * bn2[0:1] + bn2[1:2]

    # F.normalize(p=2, dim=1) / sqrt(tau): exact 1/max(||y||, eps) via rsqrt
    sq = jnp.sum(y * y, axis=1, keepdims=True)
    inv = jax.lax.rsqrt(jnp.maximum(sq, NORM_EPS * NORM_EPS))
    return y * (inv * inv_sqrt_tau)


def _cross_entropy_diag(z1, z2, inv_temperature):
    # CE(logits = z1 @ z2.T / T, targets = arange(N)) = mean_i [lse_i - diag_i]
    logits = jax.lax.dot_general(
        z1, z2, (((1,), (1,)), ((), ())),
        preferred_element_type=jnp.float32) * inv_temperature    # [N, N]
    m = jnp.max(logits, axis=1, keepdims=True)
    lse = jnp.log(jnp.sum(jnp.exp(logits - m), axis=1, keepdims=True)) + m
    diag = jnp.sum(z1 * z2, axis=1, keepdims=True) * inv_temperature
    return jnp.mean(lse - diag, keepdims=True)                   # (1, 1)


# ----------------------------------------------------------------------------
# Kernel bodies
# ----------------------------------------------------------------------------
def _view_kernel(xbar_ref, cw_ref, tw_ref, w1_ref, bn1_ref, w2_ref, bn2_ref,
                 z_ref, *, inv_sqrt_tau):
    z_ref[...] = _view_core(xbar_ref[...], cw_ref[...], tw_ref[...],
                            w1_ref[...], bn1_ref[...], w2_ref[...], bn2_ref[...],
                            inv_sqrt_tau)


def _fused_kernel(xbar_ref, cw_ref, tw_ref, w1_ref, bn1_ref, w2_ref, bn2_ref,
                  loss_ref, z1_scr, *, inv_sqrt_tau, inv_temperature):
    v = pl.program_id(0)
    z = _view_core(xbar_ref[...], cw_ref[...], tw_ref[...],
                   w1_ref[...], bn1_ref[...], w2_ref[...], bn2_ref[...],
                   inv_sqrt_tau)

    @pl.when(v == 0)
    def _():
        z1_scr[...] = z                       # view 0's normalized embeddings

    @pl.when(v == pl.num_programs(0) - 1)
    def _():
        loss_ref[...] = _cross_entropy_diag(z1_scr[...], z, inv_temperature)


def _loss_kernel(z_ref, o_ref, *, inv_temperature):
    o_ref[...] = _cross_entropy_diag(z_ref[0], z_ref[1], inv_temperature)


# ----------------------------------------------------------------------------
# pallas_call wrappers
# ----------------------------------------------------------------------------
def _view_in_specs(b, k_pad, c_pad, d_tr, d_hid, d_out):
    return [_sq_spec(b, k_pad),       # mean-patch activations [2, B, Kpad]
            _sq_spec(k_pad, c_pad),   # conv1 weights (flattened im2col)
            _sq_spec(c_pad, d_tr),    # trunk stand-in weights
            _sq_spec(d_tr, d_hid),    # projector Linear 1 (bias cancelled by BN)
            _sq_spec(2, d_hid),       # BN1 gamma/beta packed
            _sq_spec(d_hid, d_out),   # projector Linear 2 (bias cancelled by BN)
            _sq_spec(2, d_out)]       # BN2 gamma/beta packed


def _view_args(xbar, params):
    return (xbar, params["conv_w"], params["trunk_w"],
            params["w1"], params["bn1"], params["w2"], params["bn2"])


def _dims(xbar, params):
    v, b, k_pad = xbar.shape
    return (v, b, k_pad, params["conv_w"].shape[2], params["trunk_w"].shape[2],
            params["w1"].shape[2], params["w2"].shape[2])


def run_views(xbar, params, tau):
    v, b, k_pad, c_pad, d_tr, d_hid, d_out = _dims(xbar, params)
    kern = functools.partial(_view_kernel, inv_sqrt_tau=1.0 / math.sqrt(tau))
    return pl.pallas_call(
        kern,
        out_shape=jax.ShapeDtypeStruct((v, b, d_out), jnp.float32),
        grid=(v,),
        in_specs=_view_in_specs(b, k_pad, c_pad, d_tr, d_hid, d_out),
        out_specs=_sq_spec(b, d_out),
        compiler_params=pltpu.CompilerParams(
            dimension_semantics=("parallel",)),   # two views -> two TCs on v7x
    )(*_view_args(xbar, params))


def contrastive_loss(z, temperature):
    v, n, d = z.shape
    kern = functools.partial(_loss_kernel, inv_temperature=1.0 / temperature)
    out = pl.pallas_call(
        kern,
        out_shape=jax.ShapeDtypeStruct((1, 1), jnp.float32),
        in_specs=[pl.BlockSpec((v, n, d), lambda: (0, 0, 0))],
        out_specs=pl.BlockSpec((1, 1), lambda: (0, 0)),
    )(z)
    return out[0, 0]


def run_fused(xbar, params, tau, temperature):
    v, b, k_pad, c_pad, d_tr, d_hid, d_out = _dims(xbar, params)
    kern = functools.partial(_fused_kernel,
                             inv_sqrt_tau=1.0 / math.sqrt(tau),
                             inv_temperature=1.0 / temperature)
    out = pl.pallas_call(
        kern,
        out_shape=jax.ShapeDtypeStruct((1, 1), jnp.float32),
        grid=(v,),
        in_specs=_view_in_specs(b, k_pad, c_pad, d_tr, d_hid, d_out),
        out_specs=pl.BlockSpec((1, 1), lambda v_: (0, 0)),
        scratch_shapes=[pltpu.VMEM((b, d_out), jnp.float32)],   # view-0 z
        compiler_params=pltpu.CompilerParams(
            dimension_semantics=("arbitrary",)),  # step 1 reads step 0's scratch
    )(*_view_args(xbar, params))
    return out[0, 0]


# ----------------------------------------------------------------------------
# Glue: im2col (7x7 / stride-2 / pad-3) + spatial mean (no relayout), zero-pad
# the contracting dim to the shared lane-dense K. Only [B, Kpad] enters Pallas.
# ----------------------------------------------------------------------------
def _mean_patches(x, k_pad):
    patches = jax.lax.conv_general_dilated_patches(
        x, filter_shape=(7, 7), window_strides=(2, 2),
        padding=((3, 3), (3, 3)))                 # [B, C*49, Ho, Wo] (NCHW)
    xbar = jnp.mean(patches, axis=(2, 3))         # [B, C*49]
    k = xbar.shape[1]
    return jnp.pad(xbar, ((0, 0), (0, k_pad - k)))


def clip_forward(x1, x2, params, tau=1.0, temperature=1.0, fuse_loss=True):
    k_pad = params["conv_w"].shape[1]
    xb1 = _mean_patches(x1, k_pad)                # [B, Kpad]
    xb2 = _mean_patches(x2, k_pad)                # [B, Kpad]
    xbar = jnp.stack([xb1, xb2], axis=0)          # [2, B, Kpad]
    # dist.all_gather / diffdist re-ordering is an identity for world_size=1.
    if fuse_loss:
        return run_fused(xbar, params, tau, temperature)
    z = run_views(xbar, params, tau)              # [2, B, 128] normalized
    return contrastive_loss(z, temperature)


# ----------------------------------------------------------------------------
# Deterministic parameter init (shapes follow the PyTorch __init__), with zero
# lane-padding of Cout (64->128) and the im2col K dim (98/637 -> 640); weights
# stored in bf16 (halved DMA), BN params f32 packed as [view, {gamma,beta}, D].
# ----------------------------------------------------------------------------
def _init_linear_w(key, fan_in, fan_out):
    bound = 1.0 / math.sqrt(fan_in)
    return jax.random.uniform(key, (fan_in, fan_out), jnp.float32, -bound, bound)


def init_params(key):
    k = jax.random.split(key, 8)
    ndim_proj = 512            # resnet18
    d_hid, d_out = 512, 128
    c_out, c_pad = 64, 128     # Cout lane-padded to 128
    k1_real, k2_real = 2 * 49, 13 * 49
    k_pad = _round_up(max(k1_real, k2_real), 128)   # 640, shared by both views

    def pad2(w, rows, cols):
        return jnp.pad(w, ((0, rows - w.shape[0]), (0, cols - w.shape[1])))

    # conv1 weights flattened to [C*49, 64] to match the im2col layout, then
    # zero-padded (padded rows/cols are zero on the contracting side -> exact).
    conv1 = jax.random.normal(k[0], (k1_real, c_out), jnp.float32) * math.sqrt(2.0 / k1_real)
    conv2 = jax.random.normal(k[1], (k2_real, c_out), jnp.float32) * math.sqrt(2.0 / k2_real)
    conv_w = jnp.stack([pad2(conv1, k_pad, c_pad),
                        pad2(conv2, k_pad, c_pad)]).astype(jnp.bfloat16)

    trunk1 = jax.random.normal(k[2], (c_out, ndim_proj), jnp.float32) * math.sqrt(2.0 / c_out)
    trunk2 = jax.random.normal(k[3], (c_out, ndim_proj), jnp.float32) * math.sqrt(2.0 / c_out)
    trunk_w = jnp.stack([pad2(trunk1, c_pad, ndim_proj),
                         pad2(trunk2, c_pad, ndim_proj)]).astype(jnp.bfloat16)

    w1 = jnp.stack([_init_linear_w(k[4], ndim_proj, d_hid),
                    _init_linear_w(k[5], ndim_proj, d_hid)]).astype(jnp.bfloat16)
    w2 = jnp.stack([_init_linear_w(k[6], d_hid, d_out),
                    _init_linear_w(k[7], d_hid, d_out)]).astype(jnp.bfloat16)

    # Pre-BN Linear biases omitted: cancelled exactly by BN mean subtraction.
    gb1 = jnp.concatenate([jnp.ones((1, d_hid), jnp.float32),
                           jnp.zeros((1, d_hid), jnp.float32)], axis=0)
    gb2 = jnp.concatenate([jnp.ones((1, d_out), jnp.float32),
                           jnp.zeros((1, d_out), jnp.float32)], axis=0)
    bn1 = jnp.stack([gb1, gb1])    # [2, 2, 512]
    bn2 = jnp.stack([gb2, gb2])    # [2, 2, 128]

    return dict(conv_w=conv_w, trunk_w=trunk_w, w1=w1, bn1=bn1, w2=w2, bn2=bn2)


if __name__ == "__main__":
    key = jax.random.PRNGKey(0)
    kp, kx1, kx2 = jax.random.split(key, 3)
    params = init_params(kp)

    B = 8  # batch per view; n = 2*B after concat, targets = arange(B)
    x1 = jax.random.normal(kx1, (B, 2, 16, 16), jnp.float32)    # mode 's1'  (2 ch)
    x2 = jax.random.normal(kx2, (B, 13, 16, 16), jnp.float32)   # mode 's2c' (13 ch)

    # v7x has 2 TensorCores: keep the two-view "parallel" grid + a separate tiny
    # loss call there; single-TC chips (v5e/v6e) fuse the loss into the view
    # kernel to drop one dispatch and the HBM roundtrip of z.
    kind = jax.devices()[0].device_kind.lower()
    fuse = "v7" not in kind
    fwd = jax.jit(functools.partial(clip_forward, fuse_loss=fuse))

    loss = fwd(x1, x2, params)
    loss = jax.block_until_ready(loss)
    assert loss.shape == () and bool(jnp.isfinite(loss))
    print("KERNEL_OK")
</pallas_src>

<mosaic_0001>
module attributes {stable_mosaic.version = 11 : i64} {
  func.func @_fused_kernel(%arg0: i32, %arg1: memref<1x8x640xf32, #tpu.memory_space<vmem>>, %arg2: memref<1x640x128xbf16, #tpu.memory_space<vmem>>, %arg3: memref<1x128x512xbf16, #tpu.memory_space<vmem>>, %arg4: memref<1x512x512xbf16, #tpu.memory_space<vmem>>, %arg5: memref<1x2x512xf32, #tpu.memory_space<vmem>>, %arg6: memref<1x512x128xbf16, #tpu.memory_space<vmem>>, %arg7: memref<1x2x128xf32, #tpu.memory_space<vmem>>, %arg8: memref<1x1xf32, #tpu.memory_space<vmem>>, %arg9: memref<8x128xf32, #tpu.memory_space<vmem>>) attributes {dimension_semantics = [#tpu.dimension_semantics<arbitrary>], iteration_bounds = array<i64: 2>, scalar_prefetch = 0 : i64, scratch_operands = 1 : i64, tpu.core_type = #tpu.core_type<tc>, window_params = [{transform_indices = @transform_0, window_bounds = array<i64: 1, 8, 640>}, {transform_indices = @transform_1, window_bounds = array<i64: 1, 640, 128>}, {transform_indices = @transform_2, window_bounds = array<i64: 1, 128, 512>}, {transform_indices = @transform_3, window_bounds = array<i64: 1, 512, 512>}, {transform_indices = @transform_4, window_bounds = array<i64: 1, 2, 512>}, {transform_indices = @transform_5, window_bounds = array<i64: 1, 512, 128>}, {transform_indices = @transform_6, window_bounds = array<i64: 1, 2, 128>}, {pipeline_mode = #tpu.pipeline_mode<synchronous>, transform_indices = @transform_7, window_bounds = array<i64: 1, 1>}]} {
    %c0 = arith.constant 0 : index
    %c0_0 = arith.constant 0 : index
    %c0_1 = arith.constant 0 : index
    %0 = vector.load %arg1[%c0, %c0_0, %c0_1] : memref<1x8x640xf32, #tpu.memory_space<vmem>>, vector<1x8x640xf32>
    %1 = vector.shape_cast %0 : vector<1x8x640xf32> to vector<8x640xf32>
    %c0_2 = arith.constant 0 : index
    %c0_3 = arith.constant 0 : index
    %c0_4 = arith.constant 0 : index
    %2 = vector.load %arg2[%c0_2, %c0_3, %c0_4] : memref<1x640x128xbf16, #tpu.memory_space<vmem>>, vector<1x640x128xbf16>
    %3 = vector.shape_cast %2 : vector<1x640x128xbf16> to vector<640x128xbf16>
    %c0_5 = arith.constant 0 : index
    %c0_6 = arith.constant 0 : index
    %c0_7 = arith.constant 0 : index
    %4 = vector.load %arg3[%c0_5, %c0_6, %c0_7] : memref<1x128x512xbf16, #tpu.memory_space<vmem>>, vector<1x128x512xbf16>
    %5 = vector.shape_cast %4 : vector<1x128x512xbf16> to vector<128x512xbf16>
    %c0_8 = arith.constant 0 : index
    %c0_9 = arith.constant 0 : index
    %c0_10 = arith.constant 0 : index
    %6 = vector.load %arg4[%c0_8, %c0_9, %c0_10] : memref<1x512x512xbf16, #tpu.memory_space<vmem>>, vector<1x512x512xbf16>
    %7 = vector.shape_cast %6 : vector<1x512x512xbf16> to vector<512x512xbf16>
    %c0_11 = arith.constant 0 : index
    %c0_12 = arith.constant 0 : index
    %c0_13 = arith.constant 0 : index
    %8 = vector.load %arg5[%c0_11, %c0_12, %c0_13] : memref<1x2x512xf32, #tpu.memory_space<vmem>>, vector<1x2x512xf32>
    %9 = vector.shape_cast %8 : vector<1x2x512xf32> to vector<2x512xf32>
    %c0_14 = arith.constant 0 : index
    %c0_15 = arith.constant 0 : index
    %c0_16 = arith.constant 0 : index
    %10 = vector.load %arg6[%c0_14, %c0_15, %c0_16] : memref<1x512x128xbf16, #tpu.memory_space<vmem>>, vector<1x512x128xbf16>
    %11 = vector.shape_cast %10 : vector<1x512x128xbf16> to vector<512x128xbf16>
    %c0_17 = arith.constant 0 : index
    %c0_18 = arith.constant 0 : index
    %c0_19 = arith.constant 0 : index
    %12 = vector.load %arg7[%c0_17, %c0_18, %c0_19] : memref<1x2x128xf32, #tpu.memory_space<vmem>>, vector<1x2x128xf32>
    %13 = vector.shape_cast %12 : vector<1x2x128xf32> to vector<2x128xf32>
    %14 = arith.truncf %1 : vector<8x640xf32> to vector<8x640xbf16>
    %cst = arith.constant dense<0.000000e+00> : vector<8x128xf32>
    %15 = tpu.matmul %14, %3, %cst {dimension_numbers = #tpu.dot_dimension_numbers<[1], [0], [0], [1], [0, 0, 1, 1], [], []>} : vector<8x640xbf16>, vector<640x128xbf16>, vector<8x128xf32> -> vector<8x128xf32>
    %16 = arith.truncf %15 : vector<8x128xf32> to vector<8x128xbf16>
    %cst_20 = arith.constant dense<0.000000e+00> : vector<8x512xf32>
    %17 = tpu.matmul %16, %5, %cst_20 {dimension_numbers = #tpu.dot_dimension_numbers<[1], [0], [0], [1], [0, 0, 1, 1], [], []>} : vector<8x128xbf16>, vector<128x512xbf16>, vector<8x512xf32> -> vector<8x512xf32>
    %18 = arith.truncf %17 : vector<8x512xf32> to vector<8x512xbf16>
    %cst_21 = arith.constant dense<0.000000e+00> : vector<8x512xf32>
    %19 = tpu.matmul %18, %7, %cst_21 {dimension_numbers = #tpu.dot_dimension_numbers<[1], [0], [0], [1], [0, 0, 1, 1], [], []>} : vector<8x512xbf16>, vector<512x512xbf16>, vector<8x512xf32> -> vector<8x512xf32>
    %cst_22 = arith.constant dense<0.000000e+00> : vector<512xf32>
    %20 = vector.multi_reduction <add>, %19, %cst_22 [0] : vector<8x512xf32> to vector<512xf32>
    %21 = vector.shape_cast %20 : vector<512xf32> to vector<1x512xf32>
    %cst_23 = arith.constant 8.000000e+00 : f32
    %22 = vector.broadcast %cst_23 : f32 to vector<1x512xf32>
    %23 = arith.divf %21, %22 : vector<1x512xf32>
    %24 = vector.broadcast %23 : vector<1x512xf32> to vector<8x512xf32>
    %25 = arith.subf %19, %24 : vector<8x512xf32>
    %26 = vector.broadcast %23 : vector<1x512xf32> to vector<8x512xf32>
    %27 = arith.subf %19, %26 : vector<8x512xf32>
    %28 = arith.mulf %25, %27 : vector<8x512xf32>
    %cst_24 = arith.constant dense<0.000000e+00> : vector<512xf32>
    %29 = vector.multi_reduction <add>, %28, %cst_24 [0] : vector<8x512xf32> to vector<512xf32>
    %30 = vector.shape_cast %29 : vector<512xf32> to vector<1x512xf32>
    %cst_25 = arith.constant 8.000000e+00 : f32
    %31 = vector.broadcast %cst_25 : f32 to vector<1x512xf32>
    %32 = arith.divf %30, %31 : vector<1x512xf32>
    %33 = vector.broadcast %23 : vector<1x512xf32> to vector<8x512xf32>
    %34 = arith.subf %19, %33 : vector<8x512xf32>
    %cst_26 = arith.constant 9.99999974E-6 : f32
    %35 = vector.broadcast %cst_26 : f32 to vector<1x512xf32>
    %36 = arith.addf %32, %35 : vector<1x512xf32>
    %37 = math.rsqrt %36 : vector<1x512xf32>
    %38 = vector.broadcast %37 : vector<1x512xf32> to vector<8x512xf32>
    %39 = arith.mulf %34, %38 : vector<8x512xf32>
    %40 = vector.extract_strided_slice %9 {offsets = [0, 0], sizes = [1, 512], strides = [1, 1]} : vector<2x512xf32> to vector<1x512xf32>
    %41 = vector.broadcast %40 : vector<1x512xf32> to vector<8x512xf32>
    %42 = arith.mulf %39, %41 : vector<8x512xf32>
    %43 = vector.extract_strided_slice %9 {offsets = [1, 0], sizes = [1, 512], strides = [1, 1]} : vector<2x512xf32> to vector<1x512xf32>
    %44 = vector.broadcast %43 : vector<1x512xf32> to vector<8x512xf32>
    %45 = arith.addf %42, %44 : vector<8x512xf32>
    %cst_27 = arith.constant 0.000000e+00 : f32
    %46 = vector.broadcast %cst_27 : f32 to vector<8x512xf32>
    %47 = arith.maximumf %45, %46 : vector<8x512xf32>
    %48 = arith.truncf %47 : vector<8x512xf32> to vector<8x512xbf16>
    %cst_28 = arith.constant dense<0.000000e+00> : vector<8x128xf32>
    %49 = tpu.matmul %48, %11, %cst_28 {dimension_numbers = #tpu.dot_dimension_numbers<[1], [0], [0], [1], [0, 0, 1, 1], [], []>} : vector<8x512xbf16>, vector<512x128xbf16>, vector<8x128xf32> -> vector<8x128xf32>
    %cst_29 = arith.constant dense<0.000000e+00> : vector<128xf32>
    %50 = vector.multi_reduction <add>, %49, %cst_29 [0] : vector<8x128xf32> to vector<128xf32>
    %51 = vector.shape_cast %50 : vector<128xf32> to vector<1x128xf32>
    %cst_30 = arith.constant 8.000000e+00 : f32
    %52 = vector.broadcast %cst_30 : f32 to vector<1x128xf32>
    %53 = arith.divf %51, %52 : vector<1x128xf32>
    %54 = vector.broadcast %53 : vector<1x128xf32> to vector<8x128xf32>
    %55 = arith.subf %49, %54 : vector<8x128xf32>
    %56 = vector.broadcast %53 : vector<1x128xf32> to vector<8x128xf32>
    %57 = arith.subf %49, %56 : vector<8x128xf32>
    %58 = arith.mulf %55, %57 : vector<8x128xf32>
    %cst_31 = arith.constant dense<0.000000e+00> : vector<128xf32>
    %59 = vector.multi_reduction <add>, %58, %cst_31 [0] : vector<8x128xf32> to vector<128xf32>
    %60 = vector.shape_cast %59 : vector<128xf32> to vector<1x128xf32>
    %cst_32 = arith.constant 8.000000e+00 : f32
    %61 = vector.broadcast %cst_32 : f32 to vector<1x128xf32>
    %62 = arith.divf %60, %61 : vector<1x128xf32>
    %63 = vector.broadcast %53 : vector<1x128xf32> to vector<8x128xf32>
    %64 = arith.subf %49, %63 : vector<8x128xf32>
    %cst_33 = arith.constant 9.99999974E-6 : f32
    %65 = vector.broadcast %cst_33 : f32 to vector<1x128xf32>
    %66 = arith.addf %62, %65 : vector<1x128xf32>
    %67 = math.rsqrt %66 : vector<1x128xf32>
    %68 = vector.broadcast %67 : vector<1x128xf32> to vector<8x128xf32>
    %69 = arith.mulf %64, %68 : vector<8x128xf32>
    %70 = vector.extract_strided_slice %13 {offsets = [0, 0], sizes = [1, 128], strides = [1, 1]} : vector<2x128xf32> to vector<1x128xf32>
    %71 = vector.broadcast %70 : vector<1x128xf32> to vector<8x128xf32>
    %72 = arith.mulf %69, %71 : vector<8x128xf32>
    %73 = vector.extract_strided_slice %13 {offsets = [1, 0], sizes = [1, 128], strides = [1, 1]} : vector<2x128xf32> to vector<1x128xf32>
    %74 = vector.broadcast %73 : vector<1x128xf32> to vector<8x128xf32>
    %75 = arith.addf %72, %74 : vector<8x128xf32>
    %76 = arith.mulf %75, %75 : vector<8x128xf32>
    %cst_34 = arith.constant dense<0.000000e+00> : vector<8xf32>
    %77 = vector.multi_reduction <add>, %76, %cst_34 [1] : vector<8x128xf32> to vector<8xf32>
    %78 = vector.shape_cast %77 : vector<8xf32> to vector<8x1xf32>
    %cst_35 = arith.constant 1.000000e-24 : f32
    %79 = vector.broadcast %cst_35 : f32 to vector<8x1xf32>
    %80 = arith.maximumf %78, %79 : vector<8x1xf32>
    %81 = math.rsqrt %80 : vector<8x1xf32>
    %cst_36 = arith.constant 1.000000e+00 : f32
    %82 = vector.broadcast %cst_36 : f32 to vector<8x1xf32>
    %83 = arith.mulf %81, %82 : vector<8x1xf32>
    %84 = vector.broadcast %83 : vector<8x1xf32> to vector<8x128xf32>
    %85 = arith.mulf %75, %84 : vector<8x128xf32>
    %c0_i32 = arith.constant 0 : i32
    %86 = arith.cmpi eq, %arg0, %c0_i32 : i32
    %87 = arith.extui %86 : i1 to i32
    %c0_i32_37 = arith.constant 0 : i32
    %88 = arith.cmpi ne, %87, %c0_i32_37 : i32
    scf.if %88 {
      %c0_39 = arith.constant 0 : index
      %c0_40 = arith.constant 0 : index
      %92 = vector.load %arg9[%c0_39, %c0_40] : memref<8x128xf32, #tpu.memory_space<vmem>>, vector<8x128xf32>
      tpu.vector_store %arg9[%c0_39, %c0_40], %85 {strides = array<i32>} : memref<8x128xf32, #tpu.memory_space<vmem>>, vector<8x128xf32>,
    } else {
    }
    %c1_i32 = arith.constant 1 : i32
    %89 = arith.cmpi eq, %arg0, %c1_i32 : i32
    %90 = arith.extui %89 : i1 to i32
    %c0_i32_38 = arith.constant 0 : i32
    %91 = arith.cmpi ne, %90, %c0_i32_38 : i32
    scf.if %91 {
      %c0_39 = arith.constant 0 : index
      %c0_40 = arith.constant 0 : index
      %92 = vector.load %arg9[%c0_39, %c0_40] : memref<8x128xf32, #tpu.memory_space<vmem>>, vector<8x128xf32>
      %cst_41 = arith.constant dense<0.000000e+00> : vector<8x8xf32>
      %93 = tpu.matmul %92, %85, %cst_41 {dimension_numbers = #tpu.dot_dimension_numbers<[1], [1], [0], [0], [0, 0, 1, 0], [], []>} : vector<8x128xf32>, vector<8x128xf32>, vector<8x8xf32> -> vector<8x8xf32>
      %cst_42 = arith.constant 1.000000e+00 : f32
      %94 = vector.broadcast %cst_42 : f32 to vector<8x8xf32>
      %95 = arith.mulf %93, %94 : vector<8x8xf32>
      %cst_43 = arith.constant dense<0xFF800000> : vector<8xf32>
      %96 = vector.multi_reduction <maximumf>, %95, %cst_43 [1] : vector<8x8xf32> to vector<8xf32>
      %97 = vector.shape_cast %96 : vector<8xf32> to vector<8x1xf32>
      %98 = vector.broadcast %97 : vector<8x1xf32> to vector<8x8xf32>
      %99 = arith.subf %95, %98 : vector<8x8xf32>
      %100 = math.exp %99 : vector<8x8xf32>
      %cst_44 = arith.constant dense<0.000000e+00> : vector<8xf32>
      %101 = vector.multi_reduction <add>, %100, %cst_44 [1] : vector<8x8xf32> to vector<8xf32>
      %102 = vector.shape_cast %101 : vector<8xf32> to vector<8x1xf32>
      %103 = math.log %102 : vector<8x1xf32>
      %104 = arith.addf %103, %97 : vector<8x1xf32>
      %105 = arith.mulf %92, %85 : vector<8x128xf32>
      %cst_45 = arith.constant dense<0.000000e+00> : vector<8xf32>
      %106 = vector.multi_reduction <add>, %105, %cst_45 [1] : vector<8x128xf32> to vector<8xf32>
      %107 = vector.shape_cast %106 : vector<8xf32> to vector<8x1xf32>
      %cst_46 = arith.constant 1.000000e+00 : f32
      %108 = vector.broadcast %cst_46 : f32 to vector<8x1xf32>
      %109 = arith.mulf %107, %108 : vector<8x1xf32>
      %110 = arith.subf %104, %109 : vector<8x1xf32>
      %111 = vector.shape_cast %110 : vector<8x1xf32> to vector<1x8x1xf32>
      %cst_47 = arith.constant dense<0.000000e+00> : vector<1xf32>
      %112 = vector.multi_reduction <add>, %111, %cst_47 [1, 2] : vector<1x8x1xf32> to vector<1xf32>
      %113 = vector.shape_cast %112 : vector<1xf32> to vector<1x1x1xf32>
      %114 = vector.extract %113[0, 0, 0] : f32 from vector<1x1x1xf32>
      %115 = vector.broadcast %114 : f32 to vector<1x1xf32>
      %cst_48 = arith.constant 8.000000e+00 : f32
      %116 = vector.broadcast %cst_48 : f32 to vector<1x1xf32>
      %117 = arith.divf %115, %116 : vector<1x1xf32>
      %c0_49 = arith.constant 0 : index
      %c0_50 = arith.constant 0 : index
      %118 = vector.load %arg8[%c0_49, %c0_50] : memref<1x1xf32, #tpu.memory_space<vmem>>, vector<1x1xf32>
      tpu.vector_store %arg8[%c0_49, %c0_50], %117 {strides = array<i32>} : memref<1x1xf32, #tpu.memory_space<vmem>>, vector<1x1xf32>,
    } else {
    }
    return
  }
  func.func @transform_0(%arg0: i32) -> (i32, i32, i32) {
    %c0_i32 = arith.constant 0 : i32
    %c0_i32_0 = arith.constant 0 : i32
    %c0_i32_1 = arith.constant 0 : i32
    return %arg0, %c0_i32, %c0_i32_0 : i32, i32, i32
  }
  func.func @transform_1(%arg0: i32) -> (i32, i32, i32) {
    %c0_i32 = arith.constant 0 : i32
    %c0_i32_0 = arith.constant 0 : i32
    %c0_i32_1 = arith.constant 0 : i32
    return %arg0, %c0_i32, %c0_i32_0 : i32, i32, i32
  }
  func.func @transform_2(%arg0: i32) -> (i32, i32, i32) {
    %c0_i32 = arith.constant 0 : i32
    %c0_i32_0 = arith.constant 0 : i32
    %c0_i32_1 = arith.constant 0 : i32
    return %arg0, %c0_i32, %c0_i32_0 : i32, i32, i32
  }
  func.func @transform_3(%arg0: i32) -> (i32, i32, i32) {
    %c0_i32 = arith.constant 0 : i32
    %c0_i32_0 = arith.constant 0 : i32
    %c0_i32_1 = arith.constant 0 : i32
    return %arg0, %c0_i32, %c0_i32_0 : i32, i32, i32
  }
  func.func @transform_4(%arg0: i32) -> (i32, i32, i32) {
    %c0_i32 = arith.constant 0 : i32
    %c0_i32_0 = arith.constant 0 : i32
    %c0_i32_1 = arith.constant 0 : i32
    return %arg0, %c0_i32, %c0_i32_0 : i32, i32, i32
  }
  func.func @transform_5(%arg0: i32) -> (i32, i32, i32) {
    %c0_i32 = arith.constant 0 : i32
    %c0_i32_0 = arith.constant 0 : i32
    %c0_i32_1 = arith.constant 0 : i32
    return %arg0, %c0_i32, %c0_i32_0 : i32, i32, i32
  }
  func.func @transform_6(%arg0: i32) -> (i32, i32, i32) {
    %c0_i32 = arith.constant 0 : i32
    %c0_i32_0 = arith.constant 0 : i32
    %c0_i32_1 = arith.constant 0 : i32
    return %arg0, %c0_i32, %c0_i32_0 : i32, i32, i32
  }
  func.func @transform_7(%arg0: i32) -> (i32, i32) {
    %c0_i32 = arith.constant 0 : i32
    %c0_i32_0 = arith.constant 0 : i32
    %c0_i32_1 = arith.constant 0 : i32
    return %c0_i32, %c0_i32_0 : i32, i32
  }
}

</mosaic_0001>

<bundles_post_ra>
// kernel: clip_forward.1
= control target key start
LH: loop header
LB: loop body
LE: loop exit
PB: predicated region body
PF: predicated region fallthrough
CT: control target
= control target key end

     0   :  { %12 = vsyncpa [#allocation4], 0  ;;  %s3638_s24 = smov 0   ;;  %s3998_s0 = inlined_call_operand.vmem [shape: f32[2,8,640], index: 0, kind: input, shape index: {}]   ;;  %s3999_s1 = inlined_call_operand.vmem [shape: bf16[2,640,128], index: 1, kind: input, shape index: {}]   ;;  %s4000_s2 = inlined_call_operand.vmem [shape: bf16[2,128,512], index: 2, kind: input, shape index: {}]   ;;  %s4001_s3 = inlined_call_operand.vmem [shape: bf16[2,512,512], index: 3, kind: input, shape index: {}]   ;;  %s4002_s4 = inlined_call_operand.vmem [shape: f32[2,2,512], index: 4, kind: input, shape index: {}]   ;;  %s4003_s5 = inlined_call_operand.vmem [shape: bf16[2,512,128], index: 5, kind: input, shape index: {}]   ;;  %s4004_s6 = inlined_call_operand.vmem [shape: f32[2,2,128], index: 6, kind: input, shape index: {}]   ;;  %s4005_s7 = inlined_call_operand.hbm [shape: f32[1,1], index: 7, kind: output, shape index: {}]  }
   0x1 LB: > { %s3644_s25 = sadd.s32 4294967295, %s3590_s24   ;;  %p2816_p0 = scmp.ge.s32.totalorder %s3590_s24, 1  ;;  %s3590_s24 = sphi %s3638_s24, %s18_s24  }
   0x2   : > { %p292_p1 = scmp.lt.s32.totalorder %s3590_s24, 3 }
   0x4   : > { %p293_p2 = pnand %p2816_p0, %p292_p1 }
   0x5   : > { %p348_p3 = scmp.lt.s32.totalorder (!%p293_p2), %s3644_s25, 1  ;;  %v3592_v39 = vmov (!%p293_p2), 0.0   ;;  %vm3593_vm0 = vmmov (!%p293_p2), 0   ;;  %p3060_p4 = scmp.ne.s32.totalorder (!%p293_p2), %s3644_s25, 0 }
   0x6   : > { %296 = sbr.rel (%p293_p2) target bundleno = 2050 (0x802), region = 48 }
   0xd   : > { %s3650_s26 = scalar_select %p348_p3, %s3644_s25, 1 }
   0xf   : > { %s3203_s27 = smul.u32 320, %s3650_s26  ;;  %s3067_s28 = sshll.u32 %s3650_s26, 10 }
  0x10   : > { %s3657_s8 = scalar_lea.vmem %s4001_s3, %s3067_s28  ;;  %s3202_s12 = smul.u32 40, %s3650_s26 }
  0x11   : > { %s3662_s11 = scalar_lea.vmem %s3999_s1, %s3203_s27  ;;  %s3066_s16 = sshll.u32 %s3650_s26, 8 }
  0x12   : > { %v3226_v0 = vld [vmem:[%s3662_s11 + $0x40] sm:$0xff]   ;;  %v3230_v4 = vld [vmem:[%s3662_s11 + $0x48] sm:$0xff]   ;;  %v3234_v8 = vld [vmem:[%s3662_s11 + $0x50] sm:$0xff]   ;;  %s3698_s15 = scalar_lea.vmem %s3998_s0, %s3202_s12  ;;  %s3721_s19 = scalar_lea.vmem %s4000_s2, %s3066_s16 }
  0x13   : > { %v3227_v1 = vld [vmem:[%s3662_s11 + $0xc0] sm:$0xff]   ;;  %3070 = vmatprep.subr.bf16.mxu0 %v3226_v0  ;;  %v3231_v5 = vld [vmem:[%s3662_s11 + $0xc8] sm:$0xff]   ;;  %v3235_v9 = vld [vmem:[%s3662_s11 + $0xd0] sm:$0xff]   ;;  %s3751_s22 = scalar_lea.vmem %s4003_s5, %s3066_s16  ;;  %s3068_s23 = sshll.u32 %s3650_s26, 3 }
  0x14   : > { %v3228_v2 = vld [vmem:[%s3662_s11] sm:$0xff]   ;;  %3092 = vmatprep.subr.bf16.mxu1 %v3227_v1  ;;  %v3232_v6 = vld [vmem:[%s3662_s11 + $0x8] sm:$0xff]   ;;  %v3236_v10 = vld [vmem:[%s3662_s11 + $0x10] sm:$0xff]   ;;  %s372_s29 = scalar_lea.vmem %s4002_s4, %s3068_s23  ;;  %s2827_s30 = sshll.u32 %s3650_s26, 1 }
  0x15   : > { %v3229_v3 = vld [vmem:[%s3662_s11 + $0x80] sm:$0xff]   ;;  %3071 = vmatpush3.bf16.msra.mxu0 %v3228_v2  ;;  %v3233_v7 = vld [vmem:[%s3662_s11 + $0x88] sm:$0xff]   ;;  %v3237_v11 = vld [vmem:[%s3662_s11 + $0x90] sm:$0xff]   ;;  %s381_s10 = scalar_lea.vmem %s4004_s6, %s2827_s30 }
  0x16   : > { %3093 = vmatpush3.bf16.msra.mxu1 %v3229_v3  ;;  %3072 = vmatprep.subr.bf16.mxu0 %v3230_v4  ;;  %v3238_v12 = vld [vmem:[%s3662_s11 + $0x58] sm:$0xff]   ;;  %v3242_v16 = vld [vmem:[%s3662_s11 + $0x60] sm:$0xff]   ;;  %v3246_v20 = vld [vmem:[%s3662_s11 + $0x68] sm:$0xff]  }
  0x17   : > { %3094 = vmatprep.subr.bf16.mxu1 %v3231_v5  ;;  %v3239_v13 = vld [vmem:[%s3662_s11 + $0xd8] sm:$0xff]   ;;  %v3243_v17 = vld [vmem:[%s3662_s11 + $0xe0] sm:$0xff]   ;;  %v3247_v21 = vld [vmem:[%s3662_s11 + $0xe8] sm:$0xff]  }
  0x18   : > { %v3240_v14 = vld [vmem:[%s3662_s11 + $0x18] sm:$0xff]   ;;  %v3244_v18 = vld [vmem:[%s3662_s11 + $0x20] sm:$0xff]   ;;  %v3248_v22 = vld [vmem:[%s3662_s11 + $0x28] sm:$0xff]  }
  0x19   : > { %3073 = vmatpush3.bf16.msra.mxu0 %v3232_v6  ;;  %v3241_v15 = vld [vmem:[%s3662_s11 + $0x98] sm:$0xff]   ;;  %v3245_v19 = vld [vmem:[%s3662_s11 + $0xa0] sm:$0xff]   ;;  %v3249_v23 = vld [vmem:[%s3662_s11 + $0xa8] sm:$0xff]  }
  0x1a   : > { %3095 = vmatpush3.bf16.msra.mxu1 %v3233_v7  ;;  %3074 = vmatprep.subr.bf16.mxu0 %v3234_v8  ;;  %v3250_v24 = vld [vmem:[%s3662_s11 + $0x70] sm:$0xff]   ;;  %v3254_v28 = vld [vmem:[%s3662_s11 + $0x78] sm:$0xff]   ;;  %v384_v32 = vld [vmem:[%s3698_s15 + $0x8] sm:$0xff] }
  0x1b   : > { %3096 = vmatprep.subr.bf16.mxu1 %v3235_v9  ;;  %v3251_v25 = vld [vmem:[%s3662_s11 + $0xf0] sm:$0xff]   ;;  %v3255_v29 = vld [vmem:[%s3662_s11 + $0xf8] sm:$0xff]   ;;  %v383_v34 = vld [vmem:[%s3698_s15] sm:$0xff]  ;;  %v695_v35 = vpack.c.bf16 %v384_v32, %v384_v32 }
  0x1c   : > { %v3252_v26 = vld [vmem:[%s3662_s11 + $0x30] sm:$0xff]   ;;  %v3256_v30 = vld [vmem:[%s3662_s11 + $0x38] sm:$0xff]   ;;  %v694_v37 = vpack.c.bf16 %v383_v34, %v383_v34  ;;  %v3258_v41 = vld [vmem:[%s3662_s11 + $0x100] sm:$0xff]  }
  0x1d   : > { %3075 = vmatpush3.bf16.msra.mxu0 %v3236_v10  ;;  %v3253_v27 = vld [vmem:[%s3662_s11 + $0xb0] sm:$0xff]   ;;  %v3257_v31 = vld [vmem:[%s3662_s11 + $0xb8] sm:$0xff]   ;;  %971 = vmatprep.mubr.bf16.mxu0 %v695_v35  ;;  %v3259_v42 = vld [vmem:[%s3662_s11 + $0x108] sm:$0xff]  }
  0x1e   : > { %3097 = vmatpush3.bf16.msra.mxu1 %v3237_v11  ;;  %3076 = vmatprep.subr.bf16.mxu0 %v3238_v12  ;;  %v386_v33 = vld [vmem:[%s3698_s15 + $0x18] sm:$0xff]  ;;  %v385_v38 = vld [vmem:[%s3698_s15 + $0x10] sm:$0xff]  ;;  %v3262_v45 = vld [vmem:[%s3662_s11 + $0x120] sm:$0xff]  }
  0x1f   : > { %3098 = vmatprep.subr.bf16.mxu1 %v3239_v13  ;;  %v697_v36 = vpack.c.bf16 %v386_v33, %v386_v33  ;;  %v696_v40 = vpack.c.bf16 %v385_v38, %v385_v38  ;;  %v3260_v43 = vld [vmem:[%s3662_s11 + $0x110] sm:$0xff]   ;;  %v3261_v44 = vld [vmem:[%s3662_s11 + $0x118] sm:$0xff]   ;;  %v3263_v46 = vld [vmem:[%s3662_s11 + $0x128] sm:$0xff]  }
  0x20   : > { %v3264_v47 = vld [vmem:[%s3662_s11 + $0x130] sm:$0xff]   ;;  %v3265_v48 = vld [vmem:[%s3662_s11 + $0x138] sm:$0xff]   ;;  %v387_v49 = vld [vmem:[%s3698_s15 + $0x20] sm:$0xff] }
  0x21   : > { %3077 = vmatpush3.bf16.msra.mxu0 %v3240_v14  ;;  %1011 = vmatprep.mubr.bf16.mxu1 %v697_v36  ;;  %v698_v50 = vpack.c.bf16 %v387_v49, %v387_v49  ;;  %v3266_v51 = vld [vmem:[%s3721_s19] ss:$16 sps:$4 sm:$0xff]   ;;  %v3268_v52 = vld [vmem:[%s3721_s19 + $0x4] ss:$16 sps:$4 sm:$0xff]   ;;  %v3269_v53 = vld [vmem:[%s3721_s19 + $0x8] ss:$16 sps:$4 sm:$0xff]  }
  0x22   : > { %3099 = vmatpush3.bf16.msra.mxu1 %v3241_v15  ;;  %3078 = vmatprep.subr.bf16.mxu0 %v3242_v16  ;;  %v3271_v54 = vld [vmem:[%s3721_s19 + $0xc] ss:$16 sps:$4 sm:$0xff]   ;;  %v3272_v55 = vld [vmem:[%s3721_s19 + $0x20] ss:$16 sps:$4 sm:$0xff]   ;;  %v3274_v56 = vld [vmem:[%s3721_s19 + $0x24] ss:$16 sps:$4 sm:$0xff]  }
  0x23   : > { %3100 = vmatprep.subr.bf16.mxu1 %v3243_v17  ;;  %v3275_v57 = vld [vmem:[%s3721_s19 + $0x28] ss:$16 sps:$4 sm:$0xff]   ;;  %v3277_v58 = vld [vmem:[%s3721_s19 + $0x2c] ss:$16 sps:$4 sm:$0xff]   ;;  %v3280_v59 = vld [vmem:[%s3721_s19 + $0x44] ss:$16 sps:$4 sm:$0xff]  }
  0x24   : > { %v3278_v60 = vld [vmem:[%s3721_s19 + $0x40] ss:$16 sps:$4 sm:$0xff]   ;;  %v3283_v61 = vld [vmem:[%s3721_s19 + $0x4c] ss:$16 sps:$4 sm:$0xff]   ;;  %v3281_v62 = vld [vmem:[%s3721_s19 + $0x48] ss:$16 sps:$4 sm:$0xff]  }
  0x25   : > { %3079 = vmatpush3.bf16.msra.mxu0 %v3244_v18  ;;  %v3286_v63 = vld [vmem:[%s3721_s19 + $0x64] ss:$16 sps:$4 sm:$0xff]   ;;  %v3289_v0 = vld [vmem:[%s3721_s19 + $0x6c] ss:$16 sps:$4 sm:$0xff]   ;;  %v3284_v1 = vld [vmem:[%s3721_s19 + $0x60] ss:$16 sps:$4 sm:$0xff]  }
  0x26   : > { %3101 = vmatpush3.bf16.msra.mxu1 %v3245_v19  ;;  %3080 = vmatprep.subr.bf16.mxu0 %v3246_v20  ;;  %v3287_v2 = vld [vmem:[%s3721_s19 + $0x68] ss:$16 sps:$4 sm:$0xff]   ;;  %v3292_v3 = vld [vmem:[%s3721_s19 + $0x84] ss:$16 sps:$4 sm:$0xff]   ;;  %v3295_v4 = vld [vmem:[%s3721_s19 + $0x8c] ss:$16 sps:$4 sm:$0xff]  }
  0x27   : > { %3102 = vmatprep.subr.bf16.mxu1 %v3247_v21  ;;  %v3290_v5 = vld [vmem:[%s3721_s19 + $0x80] ss:$16 sps:$4 sm:$0xff]   ;;  %v3293_v6 = vld [vmem:[%s3721_s19 + $0x88] ss:$16 sps:$4 sm:$0xff]   ;;  %v3298_v7 = vld [vmem:[%s3721_s19 + $0xa4] ss:$16 sps:$4 sm:$0xff]  }
  0x28   : > { %v3296_v8 = vld [vmem:[%s3721_s19 + $0xa0] ss:$16 sps:$4 sm:$0xff]   ;;  %v3301_v9 = vld [vmem:[%s3721_s19 + $0xac] ss:$16 sps:$4 sm:$0xff]   ;;  %v3299_v10 = vld [vmem:[%s3721_s19 + $0xa8] ss:$16 sps:$4 sm:$0xff]  }
  0x29   : > { %3081 = vmatpush3.bf16.msra.mxu0 %v3248_v22  ;;  %v3304_v11 = vld [vmem:[%s3721_s19 + $0xc4] ss:$16 sps:$4 sm:$0xff]   ;;  %v3307_v12 = vld [vmem:[%s3721_s19 + $0xcc] ss:$16 sps:$4 sm:$0xff]   ;;  %v3302_v13 = vld [vmem:[%s3721_s19 + $0xc0] ss:$16 sps:$4 sm:$0xff]  }
  0x2a   : > { %3103 = vmatpush3.bf16.msra.mxu1 %v3249_v23  ;;  %3082 = vmatprep.subr.bf16.mxu0 %v3250_v24  ;;  %v3305_v14 = vld [vmem:[%s3721_s19 + $0xc8] ss:$16 sps:$4 sm:$0xff]   ;;  %v3310_v15 = vld [vmem:[%s3721_s19 + $0xe4] ss:$16 sps:$4 sm:$0xff]   ;;  %v3313_v16 = vld [vmem:[%s3721_s19 + $0xec] ss:$16 sps:$4 sm:$0xff]  }
  0x2b   : > { %3104 = vmatprep.subr.bf16.mxu1 %v3251_v25  ;;  %v3308_v17 = vld [vmem:[%s3721_s19 + $0xe0] ss:$16 sps:$4 sm:$0xff]   ;;  %v3311_v18 = vld [vmem:[%s3721_s19 + $0xe8] ss:$16 sps:$4 sm:$0xff]   ;;  %v3594_v19 = vmov 0  }
  0x2c   : > { %v3316_v20 = vld [vmem:[%s3657_s8 + $0x4] ss:$16 sps:$4 sm:$0xff]   ;;  %v3319_v21 = vld [vmem:[%s3657_s8 + $0xc] ss:$16 sps:$4 sm:$0xff]   ;;  %v3317_v38 = vld [vmem:[%s3657_s8 + $0x8] ss:$16 sps:$4 sm:$0xff]  }
  0x2d   : > { %3083 = vmatpush3.bf16.msra.mxu0 %v3252_v26  ;;  %v3334_v49 = vld [vmem:[%s3657_s8 + $0x64] ss:$16 sps:$4 sm:$0xff]  }
  0x2e   : > { %3105 = vmatpush3.bf16.msra.mxu1 %v3253_v27  ;;  %3084 = vmatprep.subr.bf16.mxu0 %v3254_v28 }
  0x2f   : > { %3106 = vmatprep.subr.bf16.mxu1 %v3255_v29 }
  0x31   : > { %3085 = vmatpush3.bf16.msra.mxu0 %v3256_v30 }
  0x32   : > { %3107 = vmatpush3.bf16.msra.mxu1 %v3257_v31  ;;  %3169 = vmatprep.subr.bf16.mxu0 %v3592_v39 }
  0x33   : > { %1220 = vmatprep.subr.bf16.mxu1 %v3268_v52  ;;  %v3335_v52 = vld [vmem:[%s3657_s8 + $0x68] ss:$16 sps:$4 sm:$0xff]  }
  0x34   : > { %972 = vmatmul.mubr.bf16.vlgmr.msra.gmra.mrb[0].mxu0 %v694_v37  ;;  %v3314_v37 = vld [vmem:[%s3657_s8] ss:$16 sps:$4 sm:$0xff]  }
  0x35   : > { %1012 = vmatmul.mubr.bf16.vlgmr.msra.gmra.mrb[0].mxu1 %v696_v40  ;;  %3170 = vmatpush3.bf16.msra.mxu0 %v3258_v41  ;;  %v3322_v41 = vld [vmem:[%s3657_s8 + $0x24] ss:$16 sps:$4 sm:$0xff]  }
  0x36   : > { %3185 = vmatprep.mubr.msk.bf16.mxu0 %vm3593_vm0, %v3592_v39  ;;  %3171 = vmatprep.subr.bf16.mxu0 %v3592_v39 }
  0x37   : > { %1221 = vmatpush1.bf16.msra.mxu1 %v3266_v51  ;;  %1252 = vmatprep.mubr.bf16.mxu1 %v3594_v19  ;;  %v3332_v51 = vld [vmem:[%s3657_s8 + $0x60] ss:$16 sps:$4 sm:$0xff]  }
  0x38   : > { %1222 = vmatprep.subr.bf16.mxu1 %v3274_v56  ;;  %v3341_v56 = vld [vmem:[%s3657_s8 + $0x88] ss:$16 sps:$4 sm:$0xff]  }
  0x39   : > { %3172 = vmatpush3.bf16.msra.mxu0 %v3259_v42  ;;  %v3325_v42 = vld [vmem:[%s3657_s8 + $0x2c] ss:$16 sps:$4 sm:$0xff]  }
  0x3a   : > { %3173 = vmatprep.subr.bf16.mxu0 %v3592_v39 }
  0x3b   : > { %1223 = vmatpush1.bf16.msra.mxu1 %v3272_v55  ;;  %v3338_v55 = vld [vmem:[%s3657_s8 + $0x80] ss:$16 sps:$4 sm:$0xff]  }
  0x3c   : > { %1224 = vmatprep.subr.bf16.mxu1 %v3280_v59  ;;  %v3344_v59 = vld [vmem:[%s3657_s8 + $0xa0] ss:$16 sps:$4 sm:$0xff]  }
  0x3d   : > { %3174 = vmatpush3.bf16.msra.mxu0 %v3260_v43  ;;  %v3320_v43 = vld [vmem:[%s3657_s8 + $0x20] ss:$16 sps:$4 sm:$0xff]  }
  0x3e   : > { %3175 = vmatprep.subr.bf16.mxu0 %v3592_v39 }
  0x3f   : > { %1225 = vmatpush1.bf16.msra.mxu1 %v3278_v60  ;;  %v3347_v60 = vld [vmem:[%s3657_s8 + $0xa8] ss:$16 sps:$4 sm:$0xff]  }
  0x40   : > { %1226 = vmatprep.subr.bf16.mxu1 %v3286_v63  ;;  %v3350_v63 = vld [vmem:[%s3657_s8 + $0xc0] ss:$16 sps:$4 sm:$0xff]  }
  0x41   : > { %3176 = vmatpush3.bf16.msra.mxu0 %v3261_v44  ;;  %v3323_v44 = vld [vmem:[%s3657_s8 + $0x28] ss:$16 sps:$4 sm:$0xff]  }
  0x42   : > { %3177 = vmatprep.subr.bf16.mxu0 %v3592_v39 }
  0x43   : > { %1227 = vmatpush1.bf16.msra.mxu1 %v3284_v1  ;;  %v3358_v1 = vld [vmem:[%s3657_s8 + $0xe4] ss:$16 sps:$4 sm:$0xff]  }
  0x44   : > { %1228 = vmatprep.subr.bf16.mxu1 %v3292_v3  ;;  %v3356_v3 = vld [vmem:[%s3657_s8 + $0xe0] ss:$16 sps:$4 sm:$0xff]  }
  0x45   : > { %3178 = vmatpush3.bf16.msra.mxu0 %v3262_v45  ;;  %v3328_v45 = vld [vmem:[%s3657_s8 + $0x44] ss:$16 sps:$4 sm:$0xff]  }
  0x46   : > { %3179 = vmatprep.subr.bf16.mxu0 %v3592_v39 }
  0x47   : > { %1229 = vmatpush1.bf16.msra.mxu1 %v3290_v5  ;;  %v3364_v5 = vld [vmem:[%s3657_s8 + $0x104] ss:$16 sps:$4 sm:$0xff]  }
  0x48   : > { %1230 = vmatprep.subr.bf16.mxu1 %v3298_v7  ;;  %v3362_v7 = vld [vmem:[%s3657_s8 + $0x100] ss:$16 sps:$4 sm:$0xff]  }
  0x49   : > { %3180 = vmatpush3.bf16.msra.mxu0 %v3263_v46  ;;  %v3331_v46 = vld [vmem:[%s3657_s8 + $0x4c] ss:$16 sps:$4 sm:$0xff]  }
  0x4a   : > { %3181 = vmatprep.subr.bf16.mxu0 %v3592_v39 }
  0x4b   : > { %1231 = vmatpush1.bf16.msra.mxu1 %v3296_v8  ;;  %v3365_v8 = vld [vmem:[%s3657_s8 + $0x108] ss:$16 sps:$4 sm:$0xff]  }
  0x4c   : > { %1232 = vmatprep.subr.bf16.mxu1 %v3304_v11  ;;  %v3368_v11 = vld [vmem:[%s3657_s8 + $0x120] ss:$16 sps:$4 sm:$0xff]  }
  0x4d   : > { %3182 = vmatpush3.bf16.msra.mxu0 %v3264_v47  ;;  %v3326_v47 = vld [vmem:[%s3657_s8 + $0x40] ss:$16 sps:$4 sm:$0xff]  }
  0x4e   : > { %3183 = vmatprep.subr.bf16.mxu0 %v3592_v39 }
  0x4f   : > { %1233 = vmatpush1.bf16.msra.mxu1 %v3302_v13  ;;  %v3376_v13 = vld [vmem:[%s3657_s8 + $0x144] ss:$16 sps:$4 sm:$0xff]  }
  0x50   : > { %1234 = vmatprep.subr.bf16.mxu1 %v3310_v15  ;;  %v3374_v15 = vld [vmem:[%s3657_s8 + $0x140] ss:$16 sps:$4 sm:$0xff]  }
  0x51   : > { %3184 = vmatpush3.bf16.msra.mxu0 %v3265_v48  ;;  %v3329_v48 = vld [vmem:[%s3657_s8 + $0x48] ss:$16 sps:$4 sm:$0xff]  }
  0x52   : > { %1261 = vmatprep.subr.bf16.mxu0 %v3271_v54  ;;  %v3343_v54 = vld [vmem:[%s3657_s8 + $0x8c] ss:$16 sps:$4 sm:$0xff]  }
  0x53   : > { %1235 = vmatpush1.bf16.msra.mxu1 %v3308_v17  ;;  %v3382_v17 = vld [vmem:[%s3657_s8 + $0x164] ss:$16 sps:$4 sm:$0xff]  }
  0x54   : > { %3186 = vmatmul.mubr.bf16.vlgmr.msra.gmra.mrb[4].mxu0 %v698_v50  ;;  %1946 = vmatprep.subr.bf16.mxu1 %v3316_v20  ;;  %v3337_v50 = vld [vmem:[%s3657_s8 + $0x6c] ss:$16 sps:$4 sm:$0xff]   ;;  %v3383_v20 = vld [vmem:[%s3657_s8 + $0x168] ss:$16 sps:$4 sm:$0xff]  }
  0x55   : > { %1262 = vmatpush1.bf16.msra.mxu0 %v3269_v53  ;;  %1293 = vmatprep.mubr.bf16.mxu0 %v3594_v19  ;;  %v3340_v53 = vld [vmem:[%s3657_s8 + $0x84] ss:$16 sps:$4 sm:$0xff]   ;;  %v3380_v19 = vld [vmem:[%s3657_s8 + $0x160] ss:$16 sps:$4 sm:$0xff]  }
  0x56   : > { %1263 = vmatprep.subr.bf16.mxu0 %v3277_v58  ;;  %v3349_v58 = vld [vmem:[%s3657_s8 + $0xac] ss:$16 sps:$4 sm:$0xff]  }
  0x59   : > { %1264 = vmatpush1.bf16.msra.mxu0 %v3275_v57  ;;  %v3346_v57 = vld [vmem:[%s3657_s8 + $0xa4] ss:$16 sps:$4 sm:$0xff]  }
  0x5a   : > { %1265 = vmatprep.subr.bf16.mxu0 %v3283_v61  ;;  %v3352_v61 = vld [vmem:[%s3657_s8 + $0xc4] ss:$16 sps:$4 sm:$0xff]  }
  0x5d   : > { %1266 = vmatpush1.bf16.msra.mxu0 %v3281_v62  ;;  %v3355_v62 = vld [vmem:[%s3657_s8 + $0xcc] ss:$16 sps:$4 sm:$0xff]  }
  0x5e   : > { %1267 = vmatprep.subr.bf16.mxu0 %v3289_v0  ;;  %v3353_v0 = vld [vmem:[%s3657_s8 + $0xc8] ss:$16 sps:$4 sm:$0xff]  }
  0x61   : > { %1268 = vmatpush1.bf16.msra.mxu0 %v3287_v2  ;;  %v3361_v2 = vld [vmem:[%s3657_s8 + $0xec] ss:$16 sps:$4 sm:$0xff]  }
  0x62   : > { %1269 = vmatprep.subr.bf16.mxu0 %v3295_v4  ;;  %v3359_v4 = vld [vmem:[%s3657_s8 + $0xe8] ss:$16 sps:$4 sm:$0xff]  }
  0x65   : > { %1270 = vmatpush1.bf16.msra.mxu0 %v3293_v6  ;;  %v3367_v6 = vld [vmem:[%s3657_s8 + $0x10c] ss:$16 sps:$4 sm:$0xff]  }
  0x66   : > { %1271 = vmatprep.subr.bf16.mxu0 %v3301_v9  ;;  %v3370_v9 = vld [vmem:[%s3657_s8 + $0x124] ss:$16 sps:$4 sm:$0xff]  }
  0x69   : > { %1272 = vmatpush1.bf16.msra.mxu0 %v3299_v10  ;;  %v3373_v10 = vld [vmem:[%s3657_s8 + $0x12c] ss:$16 sps:$4 sm:$0xff]  }
  0x6a   : > { %1273 = vmatprep.subr.bf16.mxu0 %v3307_v12  ;;  %v3371_v12 = vld [vmem:[%s3657_s8 + $0x128] ss:$16 sps:$4 sm:$0xff]  }
  0x6d   : > { %1274 = vmatpush1.bf16.msra.mxu0 %v3305_v14  ;;  %v3379_v14 = vld [vmem:[%s3657_s8 + $0x14c] ss:$16 sps:$4 sm:$0xff]  }
  0x6e   : > { %1275 = vmatprep.subr.bf16.mxu0 %v3313_v16  ;;  %v3377_v16 = vld [vmem:[%s3657_s8 + $0x148] ss:$16 sps:$4 sm:$0xff]  }
  0x71   : > { %1276 = vmatpush1.bf16.msra.mxu0 %v3311_v18  ;;  %v3385_v18 = vld [vmem:[%s3657_s8 + $0x16c] ss:$16 sps:$4 sm:$0xff]  }
  0x72   : > { %2028 = vmatprep.subr.bf16.mxu0 %v3319_v21  ;;  %v3388_v21 = vld [vmem:[%s3657_s8 + $0x184] ss:$16 sps:$4 sm:$0xff]  }
 0x107   : > { %v3086_v22 = vpop.f32.mrb[0].mxu0 }
 0x108   : > { %v3108_v23 = vpop.f32.mrb[0].mxu1  ;;  %v3087_v24 = vpop.f32.mrb[1].mxu0 }
 0x109   : > { %v3109_v25 = vpop.f32.mrb[1].mxu1  ;;  %v3088_v26 = vadd.f32 %v3087_v24, %v3086_v22  ;;  %v3089_v28 = vpop.f32.mrb[2].mxu0  ;;  %v3391_v22 = vld [vmem:[%s3657_s8 + $0x18c] ss:$16 sps:$4 sm:$0xff]   ;;  %v3389_v24 = vld [vmem:[%s3657_s8 + $0x188] ss:$16 sps:$4 sm:$0xff]  }
 0x10a   : > { %v3110_v27 = vadd.f32 %v3109_v25, %v3108_v23  ;;  %v3111_v29 = vpop.f32.mrb[2].mxu1  ;;  %v3090_v30 = vpop.f32.mrb[3].mxu0  ;;  %v3386_v23 = vld [vmem:[%s3657_s8 + $0x180] ss:$16 sps:$4 sm:$0xff]   ;;  %v3394_v25 = vld [vmem:[%s3657_s8 + $0x1a4] ss:$16 sps:$4 sm:$0xff]  }
 0x10b   : > { %v3112_v31 = vpop.f32.mrb[3].mxu1  ;;  %v3395_v28 = vld [vmem:[%s3657_s8 + $0x1a8] ss:$16 sps:$4 sm:$0xff]   ;;  %v3400_v29 = vld [vmem:[%s3657_s8 + $0x1c4] ss:$16 sps:$4 sm:$0xff]  }
 0x10c   : > { %v1014_v32 = vadd.f32 %v3110_v27, %v3088_v26  ;;  %v3397_v26 = vld [vmem:[%s3657_s8 + $0x1ac] ss:$16 sps:$4 sm:$0xff]   ;;  %v3392_v27 = vld [vmem:[%s3657_s8 + $0x1a0] ss:$16 sps:$4 sm:$0xff]  }
 0x10d   : > { %v3403_v30 = vld [vmem:[%s3657_s8 + $0x1cc] ss:$16 sps:$4 sm:$0xff]   ;;  %v3398_v31 = vld [vmem:[%s3657_s8 + $0x1c0] ss:$16 sps:$4 sm:$0xff]  }
 0x127   : > { %v1053_v33 = vpop.f32.mrb[4].mxu0 }
 0x128   : > { %v1054_v34 = vadd.f32 %v1053_v33, %v1014_v32  ;;  %v3187_v35 = vpop.f32.mrb[5].mxu0  ;;  %v3401_v32 = vld [vmem:[%s3657_s8 + $0x1c8] ss:$16 sps:$4 sm:$0xff]   ;;  %v3406_v33 = vld [vmem:[%s3657_s8 + $0x1e4] ss:$16 sps:$4 sm:$0xff]  }
 0x129   : > { %v1056_v36 = vpop.f32.mrb[6].mxu0  ;;  %v3404_v35 = vld [vmem:[%s3657_s8 + $0x1e0] ss:$16 sps:$4 sm:$0xff]  }
 0x12a   : > { %v1059_v39 = vpack.c.bf16 %v1054_v34, %v1054_v34  ;;  %v3188_v40 = vpop.f32.mrb[7].mxu0  ;;  %v3409_v34 = vld [vmem:[%s3657_s8 + $0x1ec] ss:$16 sps:$4 sm:$0xff]   ;;  %v3407_v36 = vld [vmem:[%s3657_s8 + $0x1e8] ss:$16 sps:$4 sm:$0xff]  }
 0x12c   : > { %1253 = vmatmul.mubr.bf16.vlgmr.msra.gmra.mrb[4].mxu1 %v1059_v39  ;;  %1294 = vmatmul.mubr.bf16.vlgmr.msra.gmra.mrb[8].mxu0 %v1059_v39 }
 0x12d   : > { %1947 = vmatpush1.bf16.msra.mxu1 %v3314_v37  ;;  %2029 = vmatpush1.bf16.msra.mxu0 %v3317_v38  ;;  %v3412_v37 = vld [vmem:[%s3657_s8 + $0x204] ss:$16 sps:$4 sm:$0xff]   ;;  %v3415_v38 = vld [vmem:[%s3657_s8 + $0x20c] ss:$16 sps:$4 sm:$0xff]  }
 0x12e   : > { %1948 = vmatprep.subr.bf16.mxu1 %v3322_v41  ;;  %2030 = vmatprep.subr.bf16.mxu0 %v3325_v42 }
 0x131   : > { %1949 = vmatpush1.bf16.msra.mxu1 %v3320_v43  ;;  %2031 = vmatpush1.bf16.msra.mxu0 %v3323_v44 }
 0x132   : > { %1950 = vmatprep.subr.bf16.mxu1 %v3328_v45  ;;  %2032 = vmatprep.subr.bf16.mxu0 %v3331_v46  ;;  %v3410_v46 = vld [vmem:[%s3657_s8 + $0x200] ss:$16 sps:$4 sm:$0xff]  }
 0x135   : > { %1951 = vmatpush1.bf16.msra.mxu1 %v3326_v47  ;;  %2033 = vmatpush1.bf16.msra.mxu0 %v3329_v48  ;;  %v3413_v47 = vld [vmem:[%s3657_s8 + $0x208] ss:$16 sps:$4 sm:$0xff]  }
 0x136   : > { %1952 = vmatprep.subr.bf16.mxu1 %v3334_v49  ;;  %2034 = vmatprep.subr.bf16.mxu0 %v3337_v50 }
 0x139   : > { %1953 = vmatpush1.bf16.msra.mxu1 %v3332_v51  ;;  %2035 = vmatpush1.bf16.msra.mxu0 %v3335_v52  ;;  %v3418_v51 = vld [vmem:[%s3657_s8 + $0x224] ss:$16 sps:$4 sm:$0xff]   ;;  %v3421_v52 = vld [vmem:[%s3657_s8 + $0x22c] ss:$16 sps:$4 sm:$0xff]  }
 0x13a   : > { %1954 = vmatprep.subr.bf16.mxu1 %v3340_v53  ;;  %2036 = vmatprep.subr.bf16.mxu0 %v3343_v54  ;;  %v3416_v54 = vld [vmem:[%s3657_s8 + $0x220] ss:$16 sps:$4 sm:$0xff]  }
 0x13d   : > { %1955 = vmatpush1.bf16.msra.mxu1 %v3338_v55  ;;  %2037 = vmatpush1.bf16.msra.mxu0 %v3341_v56  ;;  %v3419_v55 = vld [vmem:[%s3657_s8 + $0x228] ss:$16 sps:$4 sm:$0xff]   ;;  %v3424_v56 = vld [vmem:[%s3657_s8 + $0x244] ss:$16 sps:$4 sm:$0xff]  }
 0x13e   : > { %1956 = vmatprep.subr.bf16.mxu1 %v3346_v57  ;;  %2038 = vmatprep.subr.bf16.mxu0 %v3349_v58  ;;  %v3427_v57 = vld [vmem:[%s3657_s8 + $0x24c] ss:$16 sps:$4 sm:$0xff]   ;;  %v3422_v58 = vld [vmem:[%s3657_s8 + $0x240] ss:$16 sps:$4 sm:$0xff]  }
 0x141   : > { %1957 = vmatpush1.bf16.msra.mxu1 %v3344_v59  ;;  %2039 = vmatpush1.bf16.msra.mxu0 %v3347_v60  ;;  %v3425_v59 = vld [vmem:[%s3657_s8 + $0x248] ss:$16 sps:$4 sm:$0xff]   ;;  %v3430_v60 = vld [vmem:[%s3657_s8 + $0x264] ss:$16 sps:$4 sm:$0xff]  }
 0x142   : > { %1958 = vmatprep.subr.bf16.mxu1 %v3352_v61  ;;  %2040 = vmatprep.subr.bf16.mxu0 %v3355_v62  ;;  %v3433_v61 = vld [vmem:[%s3657_s8 + $0x26c] ss:$16 sps:$4 sm:$0xff]   ;;  %v3428_v62 = vld [vmem:[%s3657_s8 + $0x260] ss:$16 sps:$4 sm:$0xff]  }
 0x145   : > { %1959 = vmatpush1.bf16.msra.mxu1 %v3350_v63  ;;  %2041 = vmatpush1.bf16.msra.mxu0 %v3353_v0  ;;  %v3431_v63 = vld [vmem:[%s3657_s8 + $0x268] ss:$16 sps:$4 sm:$0xff]   ;;  %v3436_v0 = vld [vmem:[%s3657_s8 + $0x284] ss:$16 sps:$4 sm:$0xff]  }
 0x146   : > { %1960 = vmatprep.subr.bf16.mxu1 %v3358_v1  ;;  %2042 = vmatprep.subr.bf16.mxu0 %v3361_v2  ;;  %v3439_v1 = vld [vmem:[%s3657_s8 + $0x28c] ss:$16 sps:$4 sm:$0xff]   ;;  %v3434_v2 = vld [vmem:[%s3657_s8 + $0x280] ss:$16 sps:$4 sm:$0xff]  }
 0x149   : > { %1961 = vmatpush1.bf16.msra.mxu1 %v3356_v3  ;;  %2043 = vmatpush1.bf16.msra.mxu0 %v3359_v4  ;;  %v3437_v3 = vld [vmem:[%s3657_s8 + $0x288] ss:$16 sps:$4 sm:$0xff]   ;;  %v3442_v4 = vld [vmem:[%s3657_s8 + $0x2a4] ss:$16 sps:$4 sm:$0xff]  }
 0x14a   : > { %1962 = vmatprep.subr.bf16.mxu1 %v3364_v5  ;;  %2044 = vmatprep.subr.bf16.mxu0 %v3367_v6  ;;  %v3445_v5 = vld [vmem:[%s3657_s8 + $0x2ac] ss:$16 sps:$4 sm:$0xff]   ;;  %v3440_v6 = vld [vmem:[%s3657_s8 + $0x2a0] ss:$16 sps:$4 sm:$0xff]  }
 0x14d   : > { %1963 = vmatpush1.bf16.msra.mxu1 %v3362_v7  ;;  %2045 = vmatpush1.bf16.msra.mxu0 %v3365_v8  ;;  %v3443_v7 = vld [vmem:[%s3657_s8 + $0x2a8] ss:$16 sps:$4 sm:$0xff]   ;;  %v3448_v8 = vld [vmem:[%s3657_s8 + $0x2c4] ss:$16 sps:$4 sm:$0xff]  }
 0x14e   : > { %1964 = vmatprep.subr.bf16.mxu1 %v3370_v9  ;;  %2046 = vmatprep.subr.bf16.mxu0 %v3373_v10  ;;  %v3451_v9 = vld [vmem:[%s3657_s8 + $0x2cc] ss:$16 sps:$4 sm:$0xff]   ;;  %v3446_v10 = vld [vmem:[%s3657_s8 + $0x2c0] ss:$16 sps:$4 sm:$0xff]  }
 0x151   : > { %1965 = vmatpush1.bf16.msra.mxu1 %v3368_v11  ;;  %2047 = vmatpush1.bf16.msra.mxu0 %v3371_v12  ;;  %v3449_v11 = vld [vmem:[%s3657_s8 + $0x2c8] ss:$16 sps:$4 sm:$0xff]   ;;  %v3454_v12 = vld [vmem:[%s3657_s8 + $0x2e4] ss:$16 sps:$4 sm:$0xff]  }
 0x152   : > { %1966 = vmatprep.subr.bf16.mxu1 %v3376_v13  ;;  %2048 = vmatprep.subr.bf16.mxu0 %v3379_v14  ;;  %v3457_v13 = vld [vmem:[%s3657_s8 + $0x2ec] ss:$16 sps:$4 sm:$0xff]   ;;  %v3452_v14 = vld [vmem:[%s3657_s8 + $0x2e0] ss:$16 sps:$4 sm:$0xff]  }
 0x155   : > { %1967 = vmatpush1.bf16.msra.mxu1 %v3374_v15  ;;  %2049 = vmatpush1.bf16.msra.mxu0 %v3377_v16  ;;  %v3455_v15 = vld [vmem:[%s3657_s8 + $0x2e8] ss:$16 sps:$4 sm:$0xff]   ;;  %v3460_v16 = vld [vmem:[%s3657_s8 + $0x304] ss:$16 sps:$4 sm:$0xff]  }
 0x156   : > { %1968 = vmatprep.subr.bf16.mxu1 %v3382_v17  ;;  %2050 = vmatprep.subr.bf16.mxu0 %v3385_v18  ;;  %v3463_v17 = vld [vmem:[%s3657_s8 + $0x30c] ss:$16 sps:$4 sm:$0xff]   ;;  %v3458_v18 = vld [vmem:[%s3657_s8 + $0x300] ss:$16 sps:$4 sm:$0xff]  }
 0x159   : > { %1969 = vmatpush1.bf16.msra.mxu1 %v3380_v19  ;;  %2051 = vmatpush1.bf16.msra.mxu0 %v3383_v20  ;;  %v3461_v19 = vld [vmem:[%s3657_s8 + $0x308] ss:$16 sps:$4 sm:$0xff]   ;;  %v3466_v20 = vld [vmem:[%s3657_s8 + $0x324] ss:$16 sps:$4 sm:$0xff]  }
 0x15a   : > { %1970 = vmatprep.subr.bf16.mxu1 %v3388_v21  ;;  %2052 = vmatprep.subr.bf16.mxu0 %v3391_v22  ;;  %v3469_v21 = vld [vmem:[%s3657_s8 + $0x32c] ss:$16 sps:$4 sm:$0xff]   ;;  %v3464_v22 = vld [vmem:[%s3657_s8 + $0x320] ss:$16 sps:$4 sm:$0xff]  }
 0x15d   : > { %1971 = vmatpush1.bf16.msra.mxu1 %v3386_v23  ;;  %2053 = vmatpush1.bf16.msra.mxu0 %v3389_v24  ;;  %v3467_v23 = vld [vmem:[%s3657_s8 + $0x328] ss:$16 sps:$4 sm:$0xff]   ;;  %v3472_v24 = vld [vmem:[%s3657_s8 + $0x344] ss:$16 sps:$4 sm:$0xff]  }
 0x15e   : > { %1972 = vmatprep.subr.bf16.mxu1 %v3394_v25  ;;  %2054 = vmatprep.subr.bf16.mxu0 %v3397_v26  ;;  %v3475_v25 = vld [vmem:[%s3657_s8 + $0x34c] ss:$16 sps:$4 sm:$0xff]   ;;  %v3470_v26 = vld [vmem:[%s3657_s8 + $0x340] ss:$16 sps:$4 sm:$0xff]  }
 0x161   : > { %1973 = vmatpush1.bf16.msra.mxu1 %v3392_v27  ;;  %2055 = vmatpush1.bf16.msra.mxu0 %v3395_v28  ;;  %v3473_v27 = vld [vmem:[%s3657_s8 + $0x348] ss:$16 sps:$4 sm:$0xff]   ;;  %v3478_v28 = vld [vmem:[%s3657_s8 + $0x364] ss:$16 sps:$4 sm:$0xff]  }
 0x162   : > { %1974 = vmatprep.subr.bf16.mxu1 %v3400_v29  ;;  %2056 = vmatprep.subr.bf16.mxu0 %v3403_v30  ;;  %v3481_v29 = vld [vmem:[%s3657_s8 + $0x36c] ss:$16 sps:$4 sm:$0xff]   ;;  %v3476_v30 = vld [vmem:[%s3657_s8 + $0x360] ss:$16 sps:$4 sm:$0xff]  }
 0x165   : > { %1975 = vmatpush1.bf16.msra.mxu1 %v3398_v31  ;;  %2057 = vmatpush1.bf16.msra.mxu0 %v3401_v32  ;;  %v3479_v31 = vld [vmem:[%s3657_s8 + $0x368] ss:$16 sps:$4 sm:$0xff]   ;;  %v3484_v32 = vld [vmem:[%s3657_s8 + $0x384] ss:$16 sps:$4 sm:$0xff]  }
 0x166   : > { %1976 = vmatprep.subr.bf16.mxu1 %v3406_v33  ;;  %2058 = vmatprep.subr.bf16.mxu0 %v3409_v34  ;;  %v3487_v33 = vld [vmem:[%s3657_s8 + $0x38c] ss:$16 sps:$4 sm:$0xff]   ;;  %v3482_v34 = vld [vmem:[%s3657_s8 + $0x380] ss:$16 sps:$4 sm:$0xff]  }
 0x169   : > { %1977 = vmatpush1.bf16.msra.mxu1 %v3404_v35  ;;  %2059 = vmatpush1.bf16.msra.mxu0 %v3407_v36  ;;  %v3485_v35 = vld [vmem:[%s3657_s8 + $0x388] ss:$16 sps:$4 sm:$0xff]   ;;  %v3490_v36 = vld [vmem:[%s3657_s8 + $0x3a4] ss:$16 sps:$4 sm:$0xff]  }
 0x16a   : > { %1987 = vmatprep.subr.bf16.mxu1 %v3412_v37  ;;  %2069 = vmatprep.subr.bf16.mxu0 %v3415_v38  ;;  %v3493_v37 = vld [vmem:[%s3657_s8 + $0x3ac] ss:$16 sps:$4 sm:$0xff]   ;;  %v3488_v38 = vld [vmem:[%s3657_s8 + $0x3a0] ss:$16 sps:$4 sm:$0xff]  }
 0x1ff   : > { %v1254_v39 = vpop.f32.mrb[4].mxu1  ;;  %v3828_v40 = vpop.f32.mrb[8].mxu0 }
 0x200   : > { %v1256_v41 = vpop.f32.mrb[5].mxu1  ;;  %v1297_v42 = vpop.f32.mrb[9].mxu0  ;;  %v1302_v48 = vpack.c.bf16 %v1254_v39, %v1254_v39  ;;  %v3491_v39 = vld [vmem:[%s3657_s8 + $0x3a8] ss:$16 sps:$4 sm:$0xff]  }
 0x201   : > { %v1303_v43 = vpack.c.bf16 %v1256_v41, %v1256_v41  ;;  %v1258_v44 = vpop.f32.mrb[6].mxu1  ;;  %v1299_v45 = vpop.f32.mrb[10].mxu0  ;;  %v1305_v53 = vpack.c.bf16 %v1297_v42, %v1297_v42  ;;  %v3496_v41 = vld [vmem:[%s3657_s8 + $0x3c4] ss:$16 sps:$4 sm:$0xff]   ;;  %v3499_v42 = vld [vmem:[%s3657_s8 + $0x3cc] ss:$16 sps:$4 sm:$0xff]  }
 0x202   : > { %v1259_v49 = vpop.f32.mrb[7].mxu1  ;;  %v1300_v50 = vpop.f32.mrb[11].mxu0  ;;  %v3497_v44 = vld [vmem:[%s3657_s8 + $0x3c8] ss:$16 sps:$4 sm:$0xff]   ;;  %v3502_v45 = vld [vmem:[%s3657_s8 + $0x3e4] ss:$16 sps:$4 sm:$0xff]  }
 0x203   : > { %1978 = vmatprep.mubr.bf16.mxu1 %v1303_v43  ;;  %2060 = vmatprep.mubr.bf16.mxu0 %v1303_v43  ;;  %v3494_v43 = vld [vmem:[%s3657_s8 + $0x3c0] ss:$16 sps:$4 sm:$0xff]   ;;  %v1304_v49 = vpack.c.bf16 %v3828_v40, %v3828_v40  ;;  %v3513_v40 = vld [vmem:[%s3751_s22 + $0x88] sm:$0xff]  }
 0x204   : > { %1979 = vmatmul.mubr.bf16.vlgmr.msra.gmra.mrb[8].mxu1 %v1302_v48  ;;  %2061 = vmatmul.mubr.bf16.vlgmr.msra.gmra.mrb[12].mxu0 %v1302_v48  ;;  %v3503_v48 = vld [vmem:[%s3657_s8 + $0x3e8] ss:$16 sps:$4 sm:$0xff]   ;;  %v3506_v50 = vld [vmem:[%s3751_s22 + $0x40] sm:$0xff]  }
 0x205   : > { %1988 = vmatpush1.bf16.msra.mxu1 %v3410_v46  ;;  %2070 = vmatpush1.bf16.msra.mxu0 %v3413_v47  ;;  %v3505_v46 = vld [vmem:[%s3657_s8 + $0x3ec] ss:$16 sps:$4 sm:$0xff]   ;;  %v3500_v47 = vld [vmem:[%s3657_s8 + $0x3e0] ss:$16 sps:$4 sm:$0xff]  }
 0x206   : > { %2019 = vmatprep.mubr.bf16.mxu1 %v1305_v53  ;;  %2101 = vmatprep.mubr.bf16.mxu0 %v1305_v53  ;;  %v3509_v53 = vld [vmem:[%s3751_s22 + $0x80] sm:$0xff]  }
 0x207   : > { %1989 = vmatprep.subr.bf16.mxu1 %v3418_v51  ;;  %2071 = vmatprep.subr.bf16.mxu0 %v3421_v52  ;;  %v3507_v51 = vld [vmem:[%s3751_s22 + $0xc0] sm:$0xff]  }
 0x208   : > { %v3508_v52 = vld [vmem:[%s3751_s22] sm:$0xff]  }
 0x209   : > { %1990 = vmatpush1.bf16.msra.mxu1 %v3416_v54  ;;  %2072 = vmatpush1.bf16.msra.mxu0 %v3419_v55  ;;  %v3510_v54 = vld [vmem:[%s3751_s22 + $0x48] sm:$0xff]  }
 0x20a   : > { %1991 = vmatprep.subr.bf16.mxu1 %v3424_v56  ;;  %2073 = vmatprep.subr.bf16.mxu0 %v3427_v57  ;;  %v3511_v55 = vld [vmem:[%s3751_s22 + $0xc8] sm:$0xff]   ;;  %v3514_v57 = vld [vmem:[%s3751_s22 + $0x50] sm:$0xff]  }
 0x20b   : > { %v3512_v56 = vld [vmem:[%s3751_s22 + $0x8] sm:$0xff]  }
 0x20d   : > { %1992 = vmatpush1.bf16.msra.mxu1 %v3422_v58  ;;  %2074 = vmatpush1.bf16.msra.mxu0 %v3425_v59  ;;  %v3515_v58 = vld [vmem:[%s3751_s22 + $0xd0] sm:$0xff]  }
 0x20e   : > { %1993 = vmatprep.subr.bf16.mxu1 %v3430_v60  ;;  %2075 = vmatprep.subr.bf16.mxu0 %v3433_v61  ;;  %v3516_v59 = vld [vmem:[%s3751_s22 + $0x10] sm:$0xff]   ;;  %v3518_v61 = vld [vmem:[%s3751_s22 + $0x58] sm:$0xff]  }
 0x20f   : > { %v3517_v60 = vld [vmem:[%s3751_s22 + $0x90] sm:$0xff]  }
 0x211   : > { %1994 = vmatpush1.bf16.msra.mxu1 %v3428_v62  ;;  %2076 = vmatpush1.bf16.msra.mxu0 %v3431_v63  ;;  %v3519_v62 = vld [vmem:[%s3751_s22 + $0xd8] sm:$0xff]  }
 0x212   : > { %1995 = vmatprep.subr.bf16.mxu1 %v3436_v0  ;;  %2077 = vmatprep.subr.bf16.mxu0 %v3439_v1  ;;  %v3520_v63 = vld [vmem:[%s3751_s22 + $0x18] sm:$0xff]   ;;  %v3522_v1 = vld [vmem:[%s3751_s22 + $0x60] sm:$0xff]  }
 0x213   : > { %v3521_v0 = vld [vmem:[%s3751_s22 + $0x98] sm:$0xff]  }
 0x215   : > { %1996 = vmatpush1.bf16.msra.mxu1 %v3434_v2  ;;  %2078 = vmatpush1.bf16.msra.mxu0 %v3437_v3  ;;  %v3523_v2 = vld [vmem:[%s3751_s22 + $0xe0] sm:$0xff]  }
 0x216   : > { %1997 = vmatprep.subr.bf16.mxu1 %v3442_v4  ;;  %2079 = vmatprep.subr.bf16.mxu0 %v3445_v5  ;;  %v3524_v3 = vld [vmem:[%s3751_s22 + $0x20] sm:$0xff]   ;;  %v3526_v5 = vld [vmem:[%s3751_s22 + $0x68] sm:$0xff]  }
 0x217   : > { %v3525_v4 = vld [vmem:[%s3751_s22 + $0xa0] sm:$0xff]  }
 0x219   : > { %1998 = vmatpush1.bf16.msra.mxu1 %v3440_v6  ;;  %2080 = vmatpush1.bf16.msra.mxu0 %v3443_v7  ;;  %v3527_v6 = vld [vmem:[%s3751_s22 + $0xe8] sm:$0xff]  }
 0x21a   : > { %1999 = vmatprep.subr.bf16.mxu1 %v3448_v8  ;;  %2081 = vmatprep.subr.bf16.mxu0 %v3451_v9  ;;  %v3528_v7 = vld [vmem:[%s3751_s22 + $0x28] sm:$0xff]   ;;  %v3530_v9 = vld [vmem:[%s3751_s22 + $0x70] sm:$0xff]  }
 0x21b   : > { %v3529_v8 = vld [vmem:[%s3751_s22 + $0xa8] sm:$0xff]  }
 0x21d   : > { %2000 = vmatpush1.bf16.msra.mxu1 %v3446_v10  ;;  %2082 = vmatpush1.bf16.msra.mxu0 %v3449_v11  ;;  %v3531_v10 = vld [vmem:[%s3751_s22 + $0xf0] sm:$0xff]  }
 0x21e   : > { %2001 = vmatprep.subr.bf16.mxu1 %v3454_v12  ;;  %2083 = vmatprep.subr.bf16.mxu0 %v3457_v13  ;;  %v3532_v11 = vld [vmem:[%s3751_s22 + $0x30] sm:$0xff]   ;;  %v3534_v13 = vld [vmem:[%s3751_s22 + $0x78] sm:$0xff]  }
 0x21f   : > { %v3533_v12 = vld [vmem:[%s3751_s22 + $0xb0] sm:$0xff]  }
 0x221   : > { %2002 = vmatpush1.bf16.msra.mxu1 %v3452_v14  ;;  %2084 = vmatpush1.bf16.msra.mxu0 %v3455_v15  ;;  %v3535_v14 = vld [vmem:[%s3751_s22 + $0xf8] sm:$0xff]  }
 0x222   : > { %2003 = vmatprep.subr.bf16.mxu1 %v3460_v16  ;;  %2085 = vmatprep.subr.bf16.mxu0 %v3463_v17  ;;  %v3536_v15 = vld [vmem:[%s3751_s22 + $0x38] sm:$0xff]  }
 0x223   : > { %v3537_v16 = vld [vmem:[%s3751_s22 + $0xb8] sm:$0xff]  }
 0x225   : > { %2004 = vmatpush1.bf16.msra.mxu1 %v3458_v18  ;;  %2086 = vmatpush1.bf16.msra.mxu0 %v3461_v19 }
 0x226   : > { %2005 = vmatprep.subr.bf16.mxu1 %v3466_v20  ;;  %2087 = vmatprep.subr.bf16.mxu0 %v3469_v21 }
 0x229   : > { %2006 = vmatpush1.bf16.msra.mxu1 %v3464_v22  ;;  %2088 = vmatpush1.bf16.msra.mxu0 %v3467_v23 }
 0x22a   : > { %2007 = vmatprep.subr.bf16.mxu1 %v3472_v24  ;;  %2089 = vmatprep.subr.bf16.mxu0 %v3475_v25 }
 0x22d   : > { %2008 = vmatpush1.bf16.msra.mxu1 %v3470_v26  ;;  %2090 = vmatpush1.bf16.msra.mxu0 %v3473_v27 }
 0x22e   : > { %2009 = vmatprep.subr.bf16.mxu1 %v3478_v28  ;;  %2091 = vmatprep.subr.bf16.mxu0 %v3481_v29 }
 0x231   : > { %2010 = vmatpush1.bf16.msra.mxu1 %v3476_v30  ;;  %2092 = vmatpush1.bf16.msra.mxu0 %v3479_v31 }
 0x232   : > { %2011 = vmatprep.subr.bf16.mxu1 %v3484_v32  ;;  %2093 = vmatprep.subr.bf16.mxu0 %v3487_v33 }
 0x235   : > { %2012 = vmatpush1.bf16.msra.mxu1 %v3482_v34  ;;  %2094 = vmatpush1.bf16.msra.mxu0 %v3485_v35 }
 0x236   : > { %2013 = vmatprep.subr.bf16.mxu1 %v3490_v36  ;;  %2095 = vmatprep.subr.bf16.mxu0 %v3493_v37 }
 0x239   : > { %2014 = vmatpush1.bf16.msra.mxu1 %v3488_v38  ;;  %2096 = vmatpush1.bf16.msra.mxu0 %v3491_v39 }
 0x23a   : > { %2015 = vmatprep.subr.bf16.mxu1 %v3496_v41  ;;  %2097 = vmatprep.subr.bf16.mxu0 %v3499_v42 }
 0x23d   : > { %2016 = vmatpush1.bf16.msra.mxu1 %v3494_v43  ;;  %2098 = vmatpush1.bf16.msra.mxu0 %v3497_v44 }
 0x23e   : > { %2017 = vmatprep.subr.bf16.mxu1 %v3502_v45  ;;  %2099 = vmatprep.subr.bf16.mxu0 %v3505_v46 }
 0x241   : > { %2018 = vmatpush1.bf16.msra.mxu1 %v3500_v47  ;;  %2100 = vmatpush1.bf16.msra.mxu0 %v3503_v48 }
 0x242   : > { %3123 = vmatprep.subr.bf16.mxu1 %v3506_v50  ;;  %3145 = vmatprep.subr.bf16.mxu0 %v3507_v51 }
 0x244   : > { %2020 = vmatmul.mubr.bf16.vlgmr.msra.gmra.mrb[8].mxu1 %v1304_v49  ;;  %2102 = vmatmul.mubr.bf16.vlgmr.msra.gmra.mrb[12].mxu0 %v1304_v49 }
 0x245   : > { %3124 = vmatpush3.bf16.msra.mxu1 %v3508_v52  ;;  %3146 = vmatpush3.bf16.msra.mxu0 %v3509_v53 }
 0x246   : > { %3125 = vmatprep.subr.bf16.mxu1 %v3510_v54  ;;  %3147 = vmatprep.subr.bf16.mxu0 %v3511_v55 }
 0x249   : > { %3126 = vmatpush3.bf16.msra.mxu1 %v3512_v56  ;;  %3148 = vmatpush3.bf16.msra.mxu0 %v3513_v40 }
 0x24a   : > { %3127 = vmatprep.subr.bf16.mxu1 %v3514_v57  ;;  %3149 = vmatprep.subr.bf16.mxu0 %v3515_v58 }
 0x24d   : > { %3128 = vmatpush3.bf16.msra.mxu1 %v3516_v59  ;;  %3150 = vmatpush3.bf16.msra.mxu0 %v3517_v60 }
 0x24e   : > { %3129 = vmatprep.subr.bf16.mxu1 %v3518_v61  ;;  %3151 = vmatprep.subr.bf16.mxu0 %v3519_v62 }
 0x251   : > { %3130 = vmatpush3.bf16.msra.mxu1 %v3520_v63  ;;  %3152 = vmatpush3.bf16.msra.mxu0 %v3521_v0 }
 0x252   : > { %3131 = vmatprep.subr.bf16.mxu1 %v3522_v1  ;;  %3153 = vmatprep.subr.bf16.mxu0 %v3523_v2 }
 0x255   : > { %3132 = vmatpush3.bf16.msra.mxu1 %v3524_v3  ;;  %3154 = vmatpush3.bf16.msra.mxu0 %v3525_v4 }
 0x256   : > { %3133 = vmatprep.subr.bf16.mxu1 %v3526_v5  ;;  %3155 = vmatprep.subr.bf16.mxu0 %v3527_v6 }
 0x259   : > { %3134 = vmatpush3.bf16.msra.mxu1 %v3528_v7  ;;  %3156 = vmatpush3.bf16.msra.mxu0 %v3529_v8 }
 0x25a   : > { %3135 = vmatprep.subr.bf16.mxu1 %v3530_v9  ;;  %3157 = vmatprep.subr.bf16.mxu0 %v3531_v10 }
 0x25d   : > { %3136 = vmatpush3.bf16.msra.mxu1 %v3532_v11  ;;  %3158 = vmatpush3.bf16.msra.mxu0 %v3533_v12 }
 0x25e   : > { %3137 = vmatprep.subr.bf16.mxu1 %v3534_v13  ;;  %3159 = vmatprep.subr.bf16.mxu0 %v3535_v14 }
 0x261   : > { %3138 = vmatpush3.bf16.msra.mxu1 %v3536_v15  ;;  %3160 = vmatpush3.bf16.msra.mxu0 %v3537_v16  ;;  %v2188_v15 = vlaneseq }
 0x317   : > { %v2021_v17 = vpop.f32.mrb[8].mxu1  ;;  %v2103_v18 = vpop.f32.mrb[12].mxu0 }
 0x318   : > { %v2110_v19 = vrot.slane %v2021_v17, 4  ;;  %v2122_v20 = vrot.slane %v2103_v18, 4  ;;  %v2023_v21 = vpop.f32.mrb[9].mxu1  ;;  %v2105_v22 = vpop.f32.mrb[13].mxu0 }
 0x319   : > { %v2116_v23 = vrot.slane %v2023_v21, 4  ;;  %v2128_v24 = vrot.slane %v2105_v22, 4  ;;  %v2025_v25 = vpop.f32.mrb[10].mxu1  ;;  %v2107_v26 = vpop.f32.mrb[14].mxu0 }
 0x31a   : > { %v2111_v27 = vadd.f32 %v2110_v19, %v2021_v17  ;;  %v2123_v28 = vadd.f32 %v2122_v20, %v2103_v18  ;;  %v2026_v29 = vpop.f32.mrb[11].mxu1  ;;  %v2108_v30 = vpop.f32.mrb[15].mxu0 }
 0x31b   : > { %v2117_v31 = vadd.f32 %v2116_v23, %v2023_v21  ;;  %v2129_v32 = vadd.f32 %v2128_v24, %v2105_v22  ;;  %v2189_v24 = vshrl.u32 %v2188_v15, 7 }
 0x31c   : > { %v2112_v33 = vrot.slane %v2111_v27, 2  ;;  %v2124_v34 = vrot.slane %v2123_v28, 2 }
 0x31d   : > { %v2118_v35 = vrot.slane %v2117_v31, 2  ;;  %v2130_v36 = vrot.slane %v2129_v32, 2 }
 0x31e   : > { %v2113_v37 = vadd.f32 %v2112_v33, %v2111_v27  ;;  %v2125_v38 = vadd.f32 %v2124_v34, %v2123_v28  ;;  %v2198_v33 = vsub.s32 4, %v2189_v24  ;;  %v2194_v34 = vsub.s32 2, %v2189_v24 }
 0x31f   : > { %v2119_v39 = vadd.f32 %v2118_v35, %v2117_v31  ;;  %v2131_v41 = vadd.f32 %v2130_v36, %v2129_v32  ;;  %v3946_v31 = vsub.s32 0, %v2189_v24  ;;  %v628_v32 = vld [vmem:[%s372_s29] sm:$0xff]  ;;  %v3948_v35 = vsub.s32 1, %v2189_v24 }
 0x320   : > { %v2114_v42 = vrot.slane %v2113_v37, 1  ;;  %v2126_v43 = vrot.slane %v2125_v38, 1  ;;  %v2202_v36 = vsub.s32 6, %v2189_v24 }
 0x321   : > { %v2120_v44 = vrot.slane %v2119_v39, 1  ;;  %v2132_v45 = vrot.slane %v2131_v41, 1 }
 0x322   : > { %v2115_v46 = vadd.f32 %v2114_v42, %v2113_v37  ;;  %v2127_v47 = vadd.f32 %v2126_v43, %v2125_v38  ;;  %v2238_v37 = vsub.s32 5, %v2189_v24  ;;  %v2191_v38 = vrot.slane %v628_v32, %v3946_v31 }
 0x323   : > { %v2121_v48 = vadd.f32 %v2120_v44, %v2119_v39  ;;  %v2133_v49 = vadd.f32 %v2132_v45, %v2131_v41  ;;  %v2234_v39 = vsub.s32 3, %v2189_v24  ;;  %v2199_v41 = vrot.slane %v628_v32, %v2198_v33 }
 0x324   : > { %v2135_v50 = vmul.f32 0.125, %v2115_v46  ;;  %v2137_v51 = vmul.f32 0.125, %v2127_v47  ;;  %v2242_v42 = vsub.s32 7, %v2189_v24  ;;  %v2195_v43 = vrot.slane %v628_v32, %v2194_v34 }
 0x325   : > { %v2136_v52 = vmul.f32 0.125, %v2121_v48  ;;  %v2138_v53 = vmul.f32 0.125, %v2133_v49  ;;  %v2231_v44 = vrot.slane %v628_v32, %v3948_v35  ;;  %v2203_v45 = vrot.slane %v628_v32, %v2202_v36 }
 0x326   : > { %v3926_v54 = vsub.f32 %v2021_v17, %v2135_v50  ;;  %v3928_v55 = vsub.f32 %v2103_v18, %v2137_v51  ;;  %v2239_v46 = vrot.slane %v628_v32, %v2238_v37  ;;  %v2211_v47 = vrot.slane %v2191_v38, %v3946_v31 }
 0x327   : > { %v3930_v56 = vsub.f32 %v2023_v21, %v2136_v52  ;;  %v3932_v40 = vsub.f32 %v2105_v22, %v2138_v53  ;;  %v2235_v48 = vrot.slane %v628_v32, %v2234_v39  ;;  %v2219_v50 = vrot.slane %v2199_v41, %v3946_v31 }
 0x328   : > { %v2143_v57 = vmul.f32 %v3926_v54, %v3926_v54  ;;  %v2145_v58 = vmul.f32 %v3928_v55, %v3928_v55  ;;  %v2243_v51 = vrot.slane %v628_v32, %v2242_v42 }
 0x329   : > { %v2144_v59 = vmul.f32 %v3930_v56, %v3930_v56  ;;  %v2146_v60 = vmul.f32 %v3932_v40, %v3932_v40 }
 0x32a   : > { %v2147_v61 = vrot.slane %v2143_v57, 4  ;;  %v2159_v62 = vrot.slane %v2145_v58, 4 }
 0x32b   : > { %v2153_v63 = vrot.slane %v2144_v59, 4  ;;  %v2165_v0 = vrot.slane %v2146_v60, 4 }
 0x32c   : > { %v2148_v1 = vadd.f32 %v2147_v61, %v2143_v57  ;;  %v2160_v2 = vadd.f32 %v2159_v62, %v2145_v58  ;;  %v2215_v57 = vrot.slane %v2195_v43, %v3946_v31  ;;  %v2251_v58 = vrot.slane %v2231_v44, %v3948_v35 }
 0x32d   : > { %v2154_v3 = vadd.f32 %v2153_v63, %v2144_v59  ;;  %v2166_v4 = vadd.f32 %v2165_v0, %v2146_v60  ;;  %v2223_v61 = vrot.slane %v2203_v45, %v3946_v31  ;;  %v2259_v62 = vrot.slane %v2239_v46, %v3948_v35 }
 0x32e   : > { %v2149_v5 = vrot.slane %v2148_v1, 2  ;;  %v2161_v6 = vrot.slane %v2160_v2, 2 }
 0x32f   : > { %v2155_v7 = vrot.slane %v2154_v3, 2  ;;  %v2167_v8 = vrot.slane %v2166_v4, 2 }
 0x330   : > { %v2150_v9 = vadd.f32 %v2149_v5, %v2148_v1  ;;  %v2162_v10 = vadd.f32 %v2161_v6, %v2160_v2  ;;  %v2255_v2 = vrot.slane %v2235_v48, %v3948_v35 }
 0x331   : > { %v2156_v11 = vadd.f32 %v2155_v7, %v2154_v3  ;;  %v2168_v12 = vadd.f32 %v2167_v8, %v2166_v4  ;;  %v2263_v4 = vrot.slane %v2243_v51, %v3948_v35 }
 0x332   : > { %v2151_v13 = vrot.slane %v2150_v9, 1  ;;  %v2163_v14 = vrot.slane %v2162_v10, 1 }
 0x333   : > { %v2157_v16 = vrot.slane %v2156_v11, 1  ;;  %v2169_v17 = vrot.slane %v2168_v12, 1 }
 0x334   : > { %v2152_v18 = vadd.f32 %v2151_v13, %v2150_v9  ;;  %v2164_v19 = vadd.f32 %v2163_v14, %v2162_v10 }
 0x335   : > { %v2158_v20 = vadd.f32 %v2157_v16, %v2156_v11  ;;  %v2170_v21 = vadd.f32 %v2169_v17, %v2168_v12 }
 0x336   : > { %v2171_v22 = vmul.f32 0.125, %v2152_v18  ;;  %v2173_v23 = vmul.f32 0.125, %v2164_v19 }
 0x337   : > { %v2172_v25 = vmul.f32 0.125, %v2158_v20  ;;  %v2174_v26 = vmul.f32 0.125, %v2170_v21 }
 0x338   : > { %v2175_v27 = vadd.f32 1e-05, %v2171_v22  ;;  %v2177_v28 = vadd.f32 1e-05, %v2173_v23 }
 0x339   : > { %v2176_v29 = vadd.f32 1e-05, %v2172_v25  ;;  %v2178_v30 = vadd.f32 1e-05, %v2174_v26 }
 0x33a   : > { %3538 = vrsqrt.f32 %v2175_v27 }
 0x33b   : > { %3540 = vrsqrt.f32 %v2177_v28 }
 0x33c   : > { %3542 = vrsqrt.f32 %v2176_v29 }
 0x33d   : > { %3544 = vrsqrt.f32 %v2178_v30 }
 0x344   : > { %v3539_v49 = vpop.eup %3538 }
 0x345   : > { %v3541_v52 = vpop.eup %3540  ;;  %v2183_v53 = vmul.f32 %v3539_v49, %v3926_v54 }
 0x346   : > { %v3543_v59 = vpop.eup %3542  ;;  %v2185_v60 = vmul.f32 %v3541_v52, %v3928_v55 }
 0x347   : > { %v3545_v63 = vpop.eup %3544  ;;  %v2224_v0 = vmul.f32 %v2211_v47, %v2183_v53  ;;  %v2184_v1 = vmul.f32 %v3543_v59, %v3930_v56  ;;  %v693_v47 = vld [vmem:[%s381_s10] sm:$0x3] }
 0x348   : > { %v2226_v3 = vmul.f32 %v2219_v50, %v2185_v60  ;;  %v2186_v54 = vmul.f32 %v3545_v63, %v3932_v40  ;;  %v2570_v48 = vrot.slane %v693_v47, %v3946_v31  ;;  %v2575_v51 = vrot.slane %v693_v47, %v3948_v35 }
 0x349   : > { %v2225_v5 = vmul.f32 %v2215_v57, %v2184_v1  ;;  %v2264_v6 = vadd.f32 %v2251_v58, %v2224_v0 }
 0x34a   : > { %v2227_v7 = vmul.f32 %v2223_v61, %v2186_v54  ;;  %v2266_v8 = vadd.f32 %v2259_v62, %v2226_v3 }
 0x34b   : > { %v2265_v55 = vadd.f32 %v2255_v2, %v2225_v5  ;;  %v2268_v10 = vmax.f32 %v2264_v6, 0.0 }
 0x34c   : > { %v2267_v9 = vadd.f32 %v2263_v4, %v2227_v7  ;;  %v2270_v12 = vmax.f32 %v2266_v8, 0.0 }
 0x34d   : > { %v2269_v11 = vmax.f32 %v2265_v55, 0.0  ;;  %v2272_v56 = vpack.c.bf16 %v2268_v10, %v2268_v10 }
 0x34e   : > { %v2271_v13 = vmax.f32 %v2267_v9, 0.0  ;;  %v2274_v16 = vpack.c.bf16 %v2270_v12, %v2270_v12 }
 0x34f   : > { %v2273_v14 = vpack.c.bf16 %v2269_v11, %v2269_v11 }
 0x350   : > { %v2275_v15 = vpack.c.bf16 %v2271_v13, %v2271_v13 }
 0x351   : > { %2500 = vmatprep.mubr.bf16.mxu1 %v2273_v14 }
 0x352   : > { %2540 = vmatprep.mubr.bf16.mxu0 %v2275_v15  ;;  %2501 = vmatmul.mubr.bf16.vlgmr.msra.gmra.mrb[12].mxu1 %v2272_v56 }
 0x353   : > { %2541 = vmatmul.mubr.bf16.vlgmr.msra.gmra.mrb[16].mxu0 %v2274_v16 }
 0x425   : > { %v3139_v40 = vpop.f32.mrb[12].mxu1 }
 0x426   : > { %v3161_v17 = vpop.f32.mrb[16].mxu0  ;;  %v3140_v18 = vpop.f32.mrb[13].mxu1 }
 0x427   : > { %v3141_v19 = vadd.f32 %v3140_v18, %v3139_v40  ;;  %v3162_v20 = vpop.f32.mrb[17].mxu0  ;;  %v3142_v21 = vpop.f32.mrb[14].mxu1 }
 0x428   : > { %v3163_v22 = vadd.f32 %v3162_v20, %v3161_v17  ;;  %v3164_v23 = vpop.f32.mrb[18].mxu0  ;;  %v3143_v24 = vpop.f32.mrb[15].mxu1 }
 0x429   : > { %v3165_v25 = vpop.f32.mrb[19].mxu0 }
 0x42a   : > { %v2543_v26 = vadd.f32 %v3163_v22, %v3141_v19 }
 0x42c   : > { %v2548_v27 = vrot.slane %v2543_v26, 4 }
 0x42e   : > { %v2549_v28 = vadd.f32 %v2548_v27, %v2543_v26 }
 0x430   : > { %v2550_v29 = vrot.slane %v2549_v28, 2 }
 0x432   : > { %v2551_v30 = vadd.f32 %v2550_v29, %v2549_v28 }
 0x434   : > { %v2552_v32 = vrot.slane %v2551_v30, 1 }
 0x436   : > { %v2553_v33 = vadd.f32 %v2552_v32, %v2551_v30 }
 0x438   : > { %v2554_v34 = vmul.f32 0.125, %v2553_v33 }
 0x43a   : > { %v2555_v36 = vsub.f32 %v2543_v26, %v2554_v34 }
 0x43c   : > { %v2556_v37 = vmul.f32 %v2555_v36, %v2555_v36 }
 0x43e   : > { %v2557_v38 = vrot.slane %v2556_v37, 4 }
 0x440   : > { %v2558_v39 = vadd.f32 %v2557_v38, %v2556_v37 }
 0x442   : > { %v2559_v41 = vrot.slane %v2558_v39, 2 }
 0x444   : > { %v2560_v42 = vadd.f32 %v2559_v41, %v2558_v39 }
 0x446   : > { %v2561_v43 = vrot.slane %v2560_v42, 1 }
 0x448   : > { %v2562_v44 = vadd.f32 %v2561_v43, %v2560_v42 }
 0x44a   : > { %v2563_v45 = vmul.f32 0.125, %v2562_v44 }
 0x44c   : > { %v2564_v46 = vadd.f32 1e-05, %v2563_v45 }
 0x44e   : > { %3546 = vrsqrt.f32 %v2564_v46 }
 0x458   : > { %v3547_v49 = vpop.eup %3546 }
 0x459   : > { %v2566_v50 = vmul.f32 %v3547_v49, %v2555_v36 }
 0x45b   : > { %v2571_v52 = vmul.f32 %v2570_v48, %v2566_v50 }
 0x45d   : > { %v2576_v53 = vadd.f32 %v2575_v51, %v2571_v52 }
 0x45f   : > { %v2577_v57 = vmul.f32 %v2576_v53, %v2576_v53 }
 0x461   : > { %2578 = vadd.xlane.f32.xlu0 %v2577_v57 }
 0x4ee   : > { %v2579_v58 = vpop.xlane.xlu0 %2578 }
 0x4ef   : > { %v2580_v59 = vmax.f32 %v2579_v58, 1e-24 }
 0x4f1   : > { %3548 = vrsqrt.f32 %v2580_v59 }
 0x4f6   : > { %2586 = sbr.rel (%p3060_p4) target bundleno = 1279 (0x4ff), region = 52 }
 0x4fb   : > { %v3549_v60 = vpop.eup %3548 }
 0x4fc   : > { %v2582_v61 = vmul.f32 %v3549_v60, %v2576_v53 }
 0x4fe   : > { %2587 = vst [vmem:[#allocation2] sm:$0xff] %v2582_v61 }
 0x4ff PF: > { %p3061_p5 = scmp.ne.s32.totalorder %s3644_s25, 1 }
 0x500   : > { %v3595_v31 = vmov (!%p3061_p5), 0.0   ;;  %vm3596_vm1 = vmmov (!%p3061_p5), 0   ;;  %vm2663_vm2 = vcmask (!%p3061_p5), 64512   ;;  %vm2680_vm3 = vcmask (!%p3061_p5), 7168  }
 0x501   : > { %2591 = sbr.rel (%p3061_p5) target bundleno = 2025 (0x7e9), region = 56  ;;  %3189 = vmatprep.subr.mxu0 (!%p3061_p5), %v3595_v31  ;;  %3191 = vmatprep.mubr.msk.f32.mxu0 (!%p3061_p5), %vm3596_vm1, %v3595_v31  ;;  %vm2693_vm4 = vcmask (!%p3061_p5), 0  }
 0x502   : > { %3190 = vmatpush3.xpose.msra.mxu0 (!%p3061_p5), %v2582_v61 }
 0x505   : > { %v2592_v35 = vld [vmem:[#allocation2] sm:$0xff] (!%p3061_p5) }
 0x506   : > { %3192 = vmatmul.mubr.f32.vlgmr.msra.gmra.mrb[0].mxu0 (!%p3061_p5), %v2592_v35  ;;  %v2676_v1 = vmul.f32 (!%p3061_p5), %v2592_v35, %v2582_v61 }
 0x508   : > { %2677 = vadd.xlane.f32.xlu1 %v2676_v1 }
 0x595   : > { %v2678_v55 = vpop.xlane.xlu1 %2677 }
 0x5d9   : > { %v2659_v62 = vpop.f32.mrb[0].mxu0 }
 0x5da   : > { %v3193_v63 = vpop.f32.mrb[1].mxu0  ;;  %v2664_v0 = vsel %vm2663_vm2, %v2659_v62, -inf }
 0x5db   : > { %2665 = vmax.xlane.f32.xlu0 %v2664_v0 }
 0x668   : > { %v2666_v2 = vpop.xlane.xlu0 %2665 }
 0x669   : > { %v2667_v3 = vsub.f32 %v2659_v62, %v2666_v2 }
 0x66b   : > { %v2668_v54 = vmul.f32 1.442695, %v2667_v3 }
 0x66d   : > { %3550 = vpow2.f32 %v2668_v54 }
 0x677   : > { %v3551_v4 = vpop.eup %3550 }
 0x678   : > { %v2670_v5 = vsel %vm2663_vm2, %v3551_v4, 0.0 }
 0x679   : > { %2671 = vadd.xlane.f32.xlu0 %v2670_v5 }
 0x706   : > { %v2672_v6 = vpop.xlane.xlu0 %2671 }
 0x707   : > { %3552 = vlog2.f32 %v2672_v6 }
 0x711   : > { %v3553_v7 = vpop.eup %3552 }
 0x712   : > { %v2674_v8 = vmul.f32 0.6931472, %v3553_v7 }
 0x714   : > { %v2675_v9 = vadd.f32 %v2674_v8, %v2666_v2 }
 0x716   : > { %v2679_v10 = vsub.f32 %v2675_v9, %v2678_v55 }
 0x718   : > { %v2681_v11 = vsel %vm2680_vm3, %v2679_v10, 0.0 }
 0x719   : > { %2682 = vadd.xlane.f32.xlu1 %v2681_v11 }
 0x7a6   : > { %v2683_v12 = vpop.xlane.xlu1 %2682 }
 0x7a7   : > { %v2684_v13 = vrot.slane %v2683_v12, 4 }
 0x7a9   : > { %v2685_v14 = vadd.f32 %v2684_v13, %v2683_v12 }
 0x7ab   : > { %v2686_v15 = vrot.slane %v2685_v14, 2 }
 0x7ad   : > { %v2687_v56 = vadd.f32 %v2686_v15, %v2685_v14 }
 0x7af   : > { %v2688_v16 = vrot.slane %v2687_v56, 1 }
 0x7b1   : > { %v2689_v40 = vadd.f32 %v2688_v16, %v2687_v56 }
 0x7b3   : > { %3204 = vpush %v2689_v40 }
 0x7e4   : > { %s3205_s26 = spop %3204 }
 0x7e5   : > { %v2691_v17 = vstv %s3205_s26 }
 0x7e6   : > { %v2692_v18 = vmul.f32 0.125, %v2691_v17 }
 0x7e8   : > { %2694 = vst.msk [vmem:[#allocation3] sm:$0x1] %vm2693_vm4, %v2692_v18 }
 0x7e9 PF: > { %p3210_p6 = scmp.eq.s32.totalorder %s3644_s25, 1  ;;  %s3597_s11 = smov [#allocation3]  }
 0x7ea   : > { %s2702_s12 = sshll.u32 %s3597_s11, 4  ;;  %s2703_s12 = int_to_ptr.vmem [resolvable:$true] %s2702_s12 }
 0x7eb   : > { %s3554_s13 = scalar_lea.vmem %s2703_s12, 16  ;;  %s3560_s14 = scalar_lea.vmem %s2703_s12, 32 }
 0x7ec   : > { %p3555_p7 = scmp.ne.s32.totalorder %s2703_s12, %s3554_s13  ;;  %p3561_p10 = scmp.lt.s32.totalorder %s2703_s12, %s2703_s12 }
 0x7ed   : > { %p3562_p11 = scmp.lt.s32.totalorder %s3560_s14, %s3554_s13 }
 0x7ee   : > { %p3556_p8 = pnand %p3555_p7, %p3210_p6 }
 0x7ef   : > { %p3563_p12 = por %p3562_p11, %p3561_p10 }
 0x7f0   : > { %p3557_p9 = pneg %p3556_p8 }
 0x7f2   : > { %p3564_p13 = pnand %p3563_p12, %p3557_p9 }
 0x7f4   : > { %3567 = shalt.err (!%p3564_p13)
}
 0x7f5   : > { %s3568_s17 = scalar_lea.hbm %s4005_s7, 16 }
 0x7f6   : > { %p3569_p0 = scmp.ne.s32.totalorder %s4005_s7, %s3568_s17  ;;  %p3574_p3 = scmp.lt.u32.totalorder %s3568_s17, %s4005_s7 }
 0x7f8   : > { %p3570_p1 = pnand %p3569_p0, %p3210_p6 }
 0x7fa   : > { %p3571_p2 = pneg %p3570_p1 }
 0x7fc   : > { %p3576_p4 = pnand %p3574_p3, %p3571_p2 }
 0x7fe   : > { %3579 = shalt.err (!%p3576_p4)
}
 0x7ff   : > { %3207 = dma.vmem_to_hbm [thread:$0]  (%p3210_p6), %s2703_s12, 16, %s4005_s7, [#allocation4]  }
 0x800   : > { %3585 = dma.done.wait (%p3210_p6), [#allocation4], 16  }
 0x801   : > { %3587 = vsyncadd (%p3210_p6), [#allocation4], 4294967280 }
 0x802 PF: > { %s18_s24 = sadd.s32 1, %s3590_s24  }
 0x803   : > { %p15_p5 = scmp.ge.s32.totalorder %s18_s24, 4  }
 0x805   :  { %17 = sbr.rel (!%p15_p5) target bundleno = 1 (0x1), region = 101 }
 0x80c   :  { %2715 = vsyncpa [#allocation4], 1 }
 0x80d   :  { %2717 = vsyncpa [#allocation4 + $0x1], 1 }

</bundles_post_ra>
